<compile_context>
chip_gen: v7x
topology: tpu7x:2x2x1
jax: 0.10.0
libtpu: 0.0.40
codegen_flags: <defaults>
</compile_context>

<pallas_src>
import functools

import jax
import jax.numpy as jnp
from jax import lax
from jax.experimental import pallas as pl
from jax.experimental.pallas import tpu as pltpu

IN_DIM = 784      # MNIST pixels (kept unpadded; full-dim blocks)
HID = 400         # encoder/decoder hidden width
HID_PAD = 512     # 400 -> 512 (lane-dense)
LAT_PAD = 128     # latent lanes (mu in [0,D), log_var in [LV_OFF, LV_OFF+D))
LV_OFF = 64       # lane offset of the log_var half inside the packed head


def _vae_kernel(B_actual,
                x_ref, w1_ref, b1_ref, w2_ref, b2_ref,
                w3_ref, b3_ref, w4_ref, b4_ref, eps_ref,
                xprime_ref, kl_ref):
    """One TB-row batch tile of the full VAE forward. Weights are VMEM-resident."""
    TB = x_ref.shape[0]
    D = eps_ref.shape[1]

    # ---- encoder: Linear(784, 400) -> ReLU -> fused Linear(400, 2D) head ----
    x = x_ref[...].astype(jnp.bfloat16)                                  # in-kernel cast
    h1 = jnp.dot(x, w1_ref[...], preferred_element_type=jnp.float32) + b1_ref[...]
    h1 = jnp.maximum(h1, 0.0)
    h1b = h1.astype(jnp.bfloat16)

    # Packed head: lanes [0,D) = mu, lanes [LV_OFF, LV_OFF+D) = log_var.
    enc = jnp.dot(h1b, w2_ref[...], preferred_element_type=jnp.float32) + b2_ref[...]

    lane = lax.broadcasted_iota(jnp.int32, (TB, LAT_PAD), 1)
    is_mu = lane < LV_OFF
    mu = jnp.where(is_mu, enc, 0.0)          # mu in [0,D), 0 elsewhere
    lv = jnp.where(is_mu, 0.0, enc)          # log_var in [LV_OFF,LV_OFF+D), 0 elsewhere
    sigma = jnp.exp(0.5 * lv)                # == 1.0 on all non-log_var lanes

    # ---- expand eps (TB, D) into lanes [LV_OFF, LV_OFF+D) (tiny exact matmul) ----
    sel_r = lax.broadcasted_iota(jnp.int32, (D, LAT_PAD), 0)
    sel_c = lax.broadcasted_iota(jnp.int32, (D, LAT_PAD), 1)
    sel = (sel_c == sel_r + LV_OFF).astype(jnp.float32)
    eps128 = jnp.dot(eps_ref[...], sel, preferred_element_type=jnp.float32)

    # Packed z: mu at [0,D), sigma*eps at [LV_OFF,LV_OFF+D).  The decoder weight
    # has its rows duplicated at both offsets, so this equals (mu+sigma*eps) @ w3.
    z = mu + sigma * eps128

    # ---- KL partial: -0.5 * sum(1 + lv - mu^2 - exp(lv)) for this tile ----
    # mu lanes contribute -mu^2; log_var lanes contribute 1 + lv - sigma^2;
    # all padded lanes contribute exactly 0.  Out-of-bounds rows are masked.
    row = pl.program_id(0) * TB + lax.broadcasted_iota(jnp.int32, (TB, 1), 0)
    valid = row < B_actual
    kl_terms = jnp.where(is_mu, -(mu * mu), 1.0 + lv - sigma * sigma)
    kl_terms = jnp.where(valid, kl_terms, 0.0)
    kl_vec = -0.5 * jnp.sum(kl_terms, axis=0, keepdims=True)             # (1, 128)
    kl_ref[...] = kl_vec.reshape(1, 1, LAT_PAD)

    # ---- decoder: Linear(D, 400) -> ReLU -> Linear(400, 784) -> Sigmoid ----
    zb = z.astype(jnp.bfloat16)
    h2 = jnp.dot(zb, w3_ref[...], preferred_element_type=jnp.float32) + b3_ref[...]
    h2 = jnp.maximum(h2, 0.0)
    logits = jnp.dot(h2.astype(jnp.bfloat16), w4_ref[...],
                     preferred_element_type=jnp.float32) + b4_ref[...]
    xprime_ref[...] = jax.nn.sigmoid(logits).astype(jnp.bfloat16)        # bf16 writeback


def _pad2(a, rows, cols, dtype):
    out = jnp.zeros((rows, cols), dtype)
    return out.at[:a.shape[0], :a.shape[1]].set(a.astype(dtype))


def prepare_params(params, D):
    """One-time prep: pack the mu/log_var head, duplicate decoder rows, pad, cast."""
    w1, b1, w2, b2, w3, b3, w4, b4 = params
    bf, f32 = jnp.bfloat16, jnp.float32

    # Fused encoder head: mu -> lanes [0,D), log_var -> lanes [LV_OFF, LV_OFF+D).
    w2p = jnp.zeros((HID_PAD, LAT_PAD), bf)
    w2p = w2p.at[:HID, :D].set(w2[:, :D].astype(bf))
    w2p = w2p.at[:HID, LV_OFF:LV_OFF + D].set(w2[:, D:].astype(bf))
    b2p = jnp.zeros((1, LAT_PAD), f32)
    b2p = b2p.at[0, :D].set(b2[0, :D].astype(f32))
    b2p = b2p.at[0, LV_OFF:LV_OFF + D].set(b2[0, D:].astype(f32))

    # Decoder input weight duplicated at both lane offsets (packed z needs no roll).
    w3d = jnp.zeros((LAT_PAD, HID_PAD), bf)
    w3d = w3d.at[:D, :HID].set(w3.astype(bf))
    w3d = w3d.at[LV_OFF:LV_OFF + D, :HID].set(w3.astype(bf))

    return (
        _pad2(w1, IN_DIM, HID_PAD, bf), _pad2(b1, 1, HID_PAD, f32),
        w2p, b2p,
        w3d, _pad2(b3, 1, HID_PAD, f32),
        _pad2(w4, HID_PAD, IN_DIM, bf), _pad2(b4, 1, IN_DIM, f32),
    )


def _round_up(n, m):
    return ((n + m - 1) // m) * m


def _choose_tb(B):
    """Batch tile: no 128-row padding for tiny batches, >=2 tiles once there is
    enough work (v7x megacore), up to 256 rows for big batches (v6e DMA eff.)."""
    if B <= 32:
        return _round_up(B, 8)
    if B <= 512:
        return min(256, _round_up((B + 1) // 2, 8))
    return 256


def vae_forward(x, params, eps):
    """x: (B, 784) f32, eps: (B, D) f32 standard normal. Returns (x_prime bf16, kl)."""
    B, in_dim = x.shape
    D = params[4].shape[0]           # w3 is (D, 400)
    assert in_dim == IN_DIM and D <= LV_OFF
    pp = prepare_params(params, D)

    TB = _choose_tb(B)
    n_tiles = pl.cdiv(B, TB)
    kernel = functools.partial(_vae_kernel, B)

    def resident(shape):             # VMEM-resident across all batch tiles
        return pl.BlockSpec(shape, lambda i: (0,) * len(shape))

    in_specs = [
        pl.BlockSpec((TB, IN_DIM), lambda i: (i, 0)),              # x tile (unpadded)
        resident((IN_DIM, HID_PAD)), resident((1, HID_PAD)),       # w1, b1
        resident((HID_PAD, LAT_PAD)), resident((1, LAT_PAD)),      # packed head w2, b2
        resident((LAT_PAD, HID_PAD)), resident((1, HID_PAD)),      # w3 (dup rows), b3
        resident((HID_PAD, IN_DIM)), resident((1, IN_DIM)),        # w4, b4
        pl.BlockSpec((TB, D), lambda i: (i, 0)),                   # eps tile (unpadded)
    ]
    out_specs = (
        pl.BlockSpec((TB, IN_DIM), lambda i: (i, 0)),              # x_prime tile, bf16
        pl.BlockSpec((1, 1, LAT_PAD), lambda i: (i, 0, 0)),        # per-tile KL partial
    )

    # TODO(synk): on v7x, pipeline_mode=pl.Buffered(1) on the resident weight specs
    # would save ~1.8 MiB VMEM; omitted here to keep the build maximally portable.
    x_prime, kl_partials = pl.pallas_call(
        kernel,
        out_shape=(
            jax.ShapeDtypeStruct((B, IN_DIM), jnp.bfloat16),
            jax.ShapeDtypeStruct((n_tiles, 1, LAT_PAD), jnp.float32),
        ),
        grid=(n_tiles,),
        in_specs=in_specs,
        out_specs=out_specs,
        compiler_params=pltpu.CompilerParams(
            dimension_semantics=("parallel",),
            vmem_limit_bytes=32 * 1024 * 1024),
    )(x, *pp, eps)

    kl = jnp.sum(kl_partials) / B
    return x_prime, kl


def init_params(key, D):
    """Deterministic nn.Linear-style init: U(-1/sqrt(fan_in), 1/sqrt(fan_in))."""
    keys = jax.random.split(key, 8)

    def linear(kw, kb, fin, fout):
        bound = 1.0 / (fin ** 0.5)
        W = jax.random.uniform(kw, (fin, fout), jnp.float32, -bound, bound)
        b = jax.random.uniform(kb, (1, fout), jnp.float32, -bound, bound)
        return W, b

    w1, b1 = linear(keys[0], keys[1], 784, 400)
    w2, b2 = linear(keys[2], keys[3], 400, 2 * D)
    w3, b3 = linear(keys[4], keys[5], D, 400)
    w4, b4 = linear(keys[6], keys[7], 400, 784)
    return (w1, b1, w2, b2, w3, b3, w4, b4)


def _reference_bf16(x, params, eps):
    """Pure-JAX reference matching the kernel's bf16-matmul / f32-accum numerics
    (decoder consumes mu and sigma*eps as separately rounded bf16 operands,
    mirroring the kernel's packed-z layout)."""
    w1, b1, w2, b2, w3, b3, w4, b4 = params
    D = w3.shape[0]
    bf = jnp.bfloat16

    def dot(a, b):
        return jnp.dot(a.astype(bf), b.astype(bf), preferred_element_type=jnp.float32)

    h1 = jnp.maximum(dot(x, w1) + b1, 0.0)
    mu = dot(h1, w2[:, :D]) + b2[:, :D]
    log_var = dot(h1, w2[:, D:]) + b2[:, D:]
    sigma = jnp.exp(0.5 * log_var)
    kl = -0.5 * jnp.sum(1.0 + log_var - mu ** 2 - sigma * sigma) / x.shape[0]
    h2 = jnp.maximum(dot(mu, w3) + dot(sigma * eps, w3) + b3, 0.0)
    x_prime = jax.nn.sigmoid(dot(h2, w4) + b4)
    return x_prime, kl


def _reference_f32(x, params, eps):
    """Full-precision reference of the original module semantics."""
    w1, b1, w2, b2, w3, b3, w4, b4 = params
    D = w3.shape[0]
    h1 = jnp.maximum(x @ w1 + b1, 0.0)
    enc = h1 @ w2 + b2
    mu, log_var = enc[:, :D], enc[:, D:]
    z = mu + jnp.exp(0.5 * log_var) * eps
    kl = -0.5 * jnp.sum(1.0 + log_var - mu ** 2 - jnp.exp(log_var)) / x.shape[0]
    h2 = jnp.maximum(z @ w3 + b3, 0.0)
    x_prime = jax.nn.sigmoid(h2 @ w4 + b4)
    return x_prime, kl


if __name__ == "__main__":
    B, D = 8, 16
    key = jax.random.PRNGKey(0)
    k_x, k_eps, k_params = jax.random.split(key, 3)

    x = jax.random.uniform(k_x, (B, 784), jnp.float32)       # MNIST-like pixels in [0, 1)
    eps = jax.random.normal(k_eps, (B, D), jnp.float32)      # torch.randn_like(sigma)
    params = init_params(k_params, D)

    x_prime, kl = vae_forward(x, params, eps)
    jax.block_until_ready((x_prime, kl))

    assert x_prime.shape == (B, 784) and kl.shape == ()
    xp32 = x_prime.astype(jnp.float32)
    assert bool(jnp.all(jnp.isfinite(xp32))) and bool(jnp.isfinite(kl))

    # Tight check against a reference with matching bf16-matmul numerics
    # (kernel output is bf16, so allow ~1 ulp of bf16 on top).
    xm, km = _reference_bf16(x, params, eps)
    assert bool(jnp.allclose(xp32, xm, atol=5e-3, rtol=5e-3))
    assert bool(jnp.allclose(kl, km, atol=5e-3, rtol=5e-3))

    # Loose check against the full-f32 module semantics.
    xr, kr = _reference_f32(x, params, eps)
    assert bool(jnp.allclose(xp32, xr, atol=5e-2, rtol=5e-2))
    assert bool(jnp.allclose(kl, kr, atol=1e-1, rtol=1e-1))

    print("KERNEL_OK")
</pallas_src>

<mosaic_0001>
module attributes {stable_mosaic.version = 11 : i64} {
  func.func @_vae_kernel(%arg0: i32, %arg1: memref<8x784xf32, #tpu.memory_space<vmem>>, %arg2: memref<784x512xbf16, #tpu.memory_space<vmem>>, %arg3: memref<1x512xf32, #tpu.memory_space<vmem>>, %arg4: memref<512x128xbf16, #tpu.memory_space<vmem>>, %arg5: memref<1x128xf32, #tpu.memory_space<vmem>>, %arg6: memref<128x512xbf16, #tpu.memory_space<vmem>>, %arg7: memref<1x512xf32, #tpu.memory_space<vmem>>, %arg8: memref<512x784xbf16, #tpu.memory_space<vmem>>, %arg9: memref<1x784xf32, #tpu.memory_space<vmem>>, %arg10: memref<8x16xf32, #tpu.memory_space<vmem>>, %arg11: memref<8x784xbf16, #tpu.memory_space<vmem>>, %arg12: memref<1x1x128xf32, #tpu.memory_space<vmem>>) attributes {dimension_semantics = [#tpu.dimension_semantics<parallel>], iteration_bounds = array<i64: 1>, scalar_prefetch = 0 : i64, scratch_operands = 0 : i64, tpu.core_type = #tpu.core_type<tc>, window_params = [{transform_indices = @transform_0, window_bounds = array<i64: 8, 784>}, {pipeline_mode = #tpu.pipeline_mode<synchronous>, transform_indices = @transform_1, window_bounds = array<i64: 784, 512>}, {pipeline_mode = #tpu.pipeline_mode<synchronous>, transform_indices = @transform_2, window_bounds = array<i64: 1, 512>}, {pipeline_mode = #tpu.pipeline_mode<synchronous>, transform_indices = @transform_3, window_bounds = array<i64: 512, 128>}, {pipeline_mode = #tpu.pipeline_mode<synchronous>, transform_indices = @transform_4, window_bounds = array<i64: 1, 128>}, {pipeline_mode = #tpu.pipeline_mode<synchronous>, transform_indices = @transform_5, window_bounds = array<i64: 128, 512>}, {pipeline_mode = #tpu.pipeline_mode<synchronous>, transform_indices = @transform_6, window_bounds = array<i64: 1, 512>}, {pipeline_mode = #tpu.pipeline_mode<synchronous>, transform_indices = @transform_7, window_bounds = array<i64: 512, 784>}, {pipeline_mode = #tpu.pipeline_mode<synchronous>, transform_indices = @transform_8, window_bounds = array<i64: 1, 784>}, {transform_indices = @transform_9, window_bounds = array<i64: 8, 16>}, {transform_indices = @transform_10, window_bounds = array<i64: 8, 784>}, {transform_indices = @transform_11, window_bounds = array<i64: 1, 1, 128>}]} {
    %c0 = arith.constant 0 : index
    %c0_0 = arith.constant 0 : index
    %0 = vector.load %arg1[%c0, %c0_0] : memref<8x784xf32, #tpu.memory_space<vmem>>, vector<8x784xf32>
    %1 = arith.truncf %0 : vector<8x784xf32> to vector<8x784xbf16>
    %c0_1 = arith.constant 0 : index
    %c0_2 = arith.constant 0 : index
    %2 = vector.load %arg2[%c0_1, %c0_2] : memref<784x512xbf16, #tpu.memory_space<vmem>>, vector<784x512xbf16>
    %cst = arith.constant dense<0.000000e+00> : vector<8x512xf32>
    %3 = tpu.matmul %1, %2, %cst {dimension_numbers = #tpu.dot_dimension_numbers<[1], [0], [0], [1], [0, 0, 1, 1], [], []>} : vector<8x784xbf16>, vector<784x512xbf16>, vector<8x512xf32> -> vector<8x512xf32>
    %c0_3 = arith.constant 0 : index
    %c0_4 = arith.constant 0 : index
    %4 = vector.load %arg3[%c0_3, %c0_4] : memref<1x512xf32, #tpu.memory_space<vmem>>, vector<1x512xf32>
    %5 = vector.broadcast %4 : vector<1x512xf32> to vector<8x512xf32>
    %6 = arith.addf %3, %5 : vector<8x512xf32>
    %cst_5 = arith.constant 0.000000e+00 : f32
    %7 = vector.broadcast %cst_5 : f32 to vector<8x512xf32>
    %8 = arith.maximumf %6, %7 : vector<8x512xf32>
    %9 = arith.truncf %8 : vector<8x512xf32> to vector<8x512xbf16>
    %c0_6 = arith.constant 0 : index
    %c0_7 = arith.constant 0 : index
    %10 = vector.load %arg4[%c0_6, %c0_7] : memref<512x128xbf16, #tpu.memory_space<vmem>>, vector<512x128xbf16>
    %cst_8 = arith.constant dense<0.000000e+00> : vector<8x128xf32>
    %11 = tpu.matmul %9, %10, %cst_8 {dimension_numbers = #tpu.dot_dimension_numbers<[1], [0], [0], [1], [0, 0, 1, 1], [], []>} : vector<8x512xbf16>, vector<512x128xbf16>, vector<8x128xf32> -> vector<8x128xf32>
    %c0_9 = arith.constant 0 : index
    %c0_10 = arith.constant 0 : index
    %12 = vector.load %arg5[%c0_9, %c0_10] : memref<1x128xf32, #tpu.memory_space<vmem>>, vector<1x128xf32>
    %13 = vector.broadcast %12 : vector<1x128xf32> to vector<8x128xf32>
    %14 = arith.addf %11, %13 : vector<8x128xf32>
    %15 = tpu.iota {dimensions = array<i32: 1>} : vector<8x128xi32>
    %c64_i32 = arith.constant 64 : i32
    %16 = vector.broadcast %c64_i32 : i32 to vector<8x128xi32>
    %17 = arith.cmpi slt, %15, %16 : vector<8x128xi32>
    %cst_11 = arith.constant 0.000000e+00 : f32
    %18 = vector.broadcast %cst_11 : f32 to vector<8x128xf32>
    %19 = arith.select %17, %14, %18 : vector<8x128xi1>, vector<8x128xf32>
    %cst_12 = arith.constant 0.000000e+00 : f32
    %20 = vector.broadcast %cst_12 : f32 to vector<8x128xf32>
    %21 = arith.select %17, %20, %14 : vector<8x128xi1>, vector<8x128xf32>
    %cst_13 = arith.constant 5.000000e-01 : f32
    %22 = vector.broadcast %cst_13 : f32 to vector<8x128xf32>
    %23 = arith.mulf %22, %21 : vector<8x128xf32>
    %24 = math.exp %23 : vector<8x128xf32>
    %25 = tpu.iota {dimensions = array<i32: 0>} : vector<16x128xi32>
    %26 = tpu.iota {dimensions = array<i32: 1>} : vector<16x128xi32>
    %c64_i32_14 = arith.constant 64 : i32
    %27 = vector.broadcast %c64_i32_14 : i32 to vector<16x128xi32>
    %28 = arith.addi %25, %27 : vector<16x128xi32>
    %29 = arith.cmpi eq, %26, %28 : vector<16x128xi32>
    %30 = arith.extui %29 : vector<16x128xi1> to vector<16x128xi32>
    %31 = arith.sitofp %30 : vector<16x128xi32> to vector<16x128xf32>
    %c0_15 = arith.constant 0 : index
    %c0_16 = arith.constant 0 : index
    %32 = vector.load %arg10[%c0_15, %c0_16] : memref<8x16xf32, #tpu.memory_space<vmem>>, vector<8x16xf32>
    %cst_17 = arith.constant dense<0.000000e+00> : vector<8x128xf32>
    %33 = tpu.matmul %32, %31, %cst_17 {dimension_numbers = #tpu.dot_dimension_numbers<[1], [0], [0], [1], [0, 0, 1, 1], [], []>} : vector<8x16xf32>, vector<16x128xf32>, vector<8x128xf32> -> vector<8x128xf32>
    %34 = arith.mulf %24, %33 : vector<8x128xf32>
    %35 = arith.addf %19, %34 : vector<8x128xf32>
    %c8_i32 = arith.constant 8 : i32
    %36 = arith.muli %arg0, %c8_i32 : i32
    %37 = tpu.iota {dimensions = array<i32: 0>} : vector<8x1xi32>
    %38 = vector.broadcast %36 : i32 to vector<8x1xi32>
    %39 = arith.addi %38, %37 : vector<8x1xi32>
    %c8_i32_18 = arith.constant 8 : i32
    %40 = vector.broadcast %c8_i32_18 : i32 to vector<8x1xi32>
    %41 = arith.cmpi slt, %39, %40 : vector<8x1xi32>
    %42 = arith.mulf %19, %19 : vector<8x128xf32>
    %cst_19 = arith.constant 0.000000e+00 : f32
    %43 = vector.broadcast %cst_19 : f32 to vector<8x128xf32>
    %44 = arith.subf %43, %42 : vector<8x128xf32>
    %cst_20 = arith.constant 1.000000e+00 : f32
    %45 = vector.broadcast %cst_20 : f32 to vector<8x128xf32>
    %46 = arith.addf %45, %21 : vector<8x128xf32>
    %47 = arith.mulf %24, %24 : vector<8x128xf32>
    %48 = arith.subf %46, %47 : vector<8x128xf32>
    %49 = arith.select %17, %44, %48 : vector<8x128xi1>, vector<8x128xf32>
    %cst_21 = arith.constant 0.000000e+00 : f32
    %50 = vector.shape_cast %41 : vector<8x1xi1> to vector<8x1xi1>
    %51 = vector.broadcast %50 : vector<8x1xi1> to vector<8x128xi1>
    %52 = vector.broadcast %cst_21 : f32 to vector<8x128xf32>
    %53 = arith.select %51, %49, %52 : vector<8x128xi1>, vector<8x128xf32>
    %cst_22 = arith.constant dense<0.000000e+00> : vector<128xf32>
    %54 = vector.multi_reduction <add>, %53, %cst_22 [0] : vector<8x128xf32> to vector<128xf32>
    %55 = vector.shape_cast %54 : vector<128xf32> to vector<1x128xf32>
    %cst_23 = arith.constant -5.000000e-01 : f32
    %56 = vector.broadcast %cst_23 : f32 to vector<1x128xf32>
    %57 = arith.mulf %56, %55 : vector<1x128xf32>
    %58 = vector.shape_cast %57 : vector<1x128xf32> to vector<1x1x128xf32>
    %c0_24 = arith.constant 0 : index
    %c0_25 = arith.constant 0 : index
    %c0_26 = arith.constant 0 : index
    %59 = vector.load %arg12[%c0_24, %c0_25, %c0_26] : memref<1x1x128xf32, #tpu.memory_space<vmem>>, vector<1x1x128xf32>
    tpu.vector_store %arg12[%c0_24, %c0_25, %c0_26], %58 {strides = array<i32>} : memref<1x1x128xf32, #tpu.memory_space<vmem>>, vector<1x1x128xf32>,
    %60 = arith.truncf %35 : vector<8x128xf32> to vector<8x128xbf16>
    %c0_27 = arith.constant 0 : index
    %c0_28 = arith.constant 0 : index
    %61 = vector.load %arg6[%c0_27, %c0_28] : memref<128x512xbf16, #tpu.memory_space<vmem>>, vector<128x512xbf16>
    %cst_29 = arith.constant dense<0.000000e+00> : vector<8x512xf32>
    %62 = tpu.matmul %60, %61, %cst_29 {dimension_numbers = #tpu.dot_dimension_numbers<[1], [0], [0], [1], [0, 0, 1, 1], [], []>} : vector<8x128xbf16>, vector<128x512xbf16>, vector<8x512xf32> -> vector<8x512xf32>
    %c0_30 = arith.constant 0 : index
    %c0_31 = arith.constant 0 : index
    %63 = vector.load %arg7[%c0_30, %c0_31] : memref<1x512xf32, #tpu.memory_space<vmem>>, vector<1x512xf32>
    %64 = vector.broadcast %63 : vector<1x512xf32> to vector<8x512xf32>
    %65 = arith.addf %62, %64 : vector<8x512xf32>
    %cst_32 = arith.constant 0.000000e+00 : f32
    %66 = vector.broadcast %cst_32 : f32 to vector<8x512xf32>
    %67 = arith.maximumf %65, %66 : vector<8x512xf32>
    %68 = arith.truncf %67 : vector<8x512xf32> to vector<8x512xbf16>
    %c0_33 = arith.constant 0 : index
    %c0_34 = arith.constant 0 : index
    %69 = vector.load %arg8[%c0_33, %c0_34] : memref<512x784xbf16, #tpu.memory_space<vmem>>, vector<512x784xbf16>
    %cst_35 = arith.constant dense<0.000000e+00> : vector<8x784xf32>
    %70 = tpu.matmul %68, %69, %cst_35 {dimension_numbers = #tpu.dot_dimension_numbers<[1], [0], [0], [1], [0, 0, 1, 1], [], []>} : vector<8x512xbf16>, vector<512x784xbf16>, vector<8x784xf32> -> vector<8x784xf32>
    %c0_36 = arith.constant 0 : index
    %c0_37 = arith.constant 0 : index
    %71 = vector.load %arg9[%c0_36, %c0_37] : memref<1x784xf32, #tpu.memory_space<vmem>>, vector<1x784xf32>
    %72 = vector.broadcast %71 : vector<1x784xf32> to vector<8x784xf32>
    %73 = arith.addf %70, %72 : vector<8x784xf32>
    %74 = arith.negf %73 : vector<8x784xf32>
    %75 = math.exp %74 : vector<8x784xf32>
    %cst_38 = arith.constant 1.000000e+00 : f32
    %76 = vector.broadcast %cst_38 : f32 to vector<8x784xf32>
    %77 = arith.addf %76, %75 : vector<8x784xf32>
    %78 = arith.divf %76, %77 : vector<8x784xf32>
    %79 = arith.truncf %78 : vector<8x784xf32> to vector<8x784xbf16>
    %c0_39 = arith.constant 0 : index
    %c0_40 = arith.constant 0 : index
    %80 = vector.load %arg11[%c0_39, %c0_40] : memref<8x784xbf16, #tpu.memory_space<vmem>>, vector<8x784xbf16>
    tpu.vector_store %arg11[%c0_39, %c0_40], %79 {strides = array<i32>} : memref<8x784xbf16, #tpu.memory_space<vmem>>, vector<8x784xbf16>,
    return
  }
  func.func @transform_0(%arg0: i32) -> (i32, i32) {
    %c0_i32 = arith.constant 0 : i32
    %c0_i32_0 = arith.constant 0 : i32
    return %arg0, %c0_i32 : i32, i32
  }
  func.func @transform_1(%arg0: i32) -> (i32, i32) {
    %c0_i32 = arith.constant 0 : i32
    %c0_i32_0 = arith.constant 0 : i32
    %c0_i32_1 = arith.constant 0 : i32
    return %c0_i32, %c0_i32_0 : i32, i32
  }
  func.func @transform_2(%arg0: i32) -> (i32, i32) {
    %c0_i32 = arith.constant 0 : i32
    %c0_i32_0 = arith.constant 0 : i32
    %c0_i32_1 = arith.constant 0 : i32
    return %c0_i32, %c0_i32_0 : i32, i32
  }
  func.func @transform_3(%arg0: i32) -> (i32, i32) {
    %c0_i32 = arith.constant 0 : i32
    %c0_i32_0 = arith.constant 0 : i32
    %c0_i32_1 = arith.constant 0 : i32
    return %c0_i32, %c0_i32_0 : i32, i32
  }
  func.func @transform_4(%arg0: i32) -> (i32, i32) {
    %c0_i32 = arith.constant 0 : i32
    %c0_i32_0 = arith.constant 0 : i32
    %c0_i32_1 = arith.constant 0 : i32
    return %c0_i32, %c0_i32_0 : i32, i32
  }
  func.func @transform_5(%arg0: i32) -> (i32, i32) {
    %c0_i32 = arith.constant 0 : i32
    %c0_i32_0 = arith.constant 0 : i32
    %c0_i32_1 = arith.constant 0 : i32
    return %c0_i32, %c0_i32_0 : i32, i32
  }
  func.func @transform_6(%arg0: i32) -> (i32, i32) {
    %c0_i32 = arith.constant 0 : i32
    %c0_i32_0 = arith.constant 0 : i32
    %c0_i32_1 = arith.constant 0 : i32
    return %c0_i32, %c0_i32_0 : i32, i32
  }
  func.func @transform_7(%arg0: i32) -> (i32, i32) {
    %c0_i32 = arith.constant 0 : i32
    %c0_i32_0 = arith.constant 0 : i32
    %c0_i32_1 = arith.constant 0 : i32
    return %c0_i32, %c0_i32_0 : i32, i32
  }
  func.func @transform_8(%arg0: i32) -> (i32, i32) {
    %c0_i32 = arith.constant 0 : i32
    %c0_i32_0 = arith.constant 0 : i32
    %c0_i32_1 = arith.constant 0 : i32
    return %c0_i32, %c0_i32_0 : i32, i32
  }
  func.func @transform_9(%arg0: i32) -> (i32, i32) {
    %c0_i32 = arith.constant 0 : i32
    %c0_i32_0 = arith.constant 0 : i32
    return %arg0, %c0_i32 : i32, i32
  }
  func.func @transform_10(%arg0: i32) -> (i32, i32) {
    %c0_i32 = arith.constant 0 : i32
    %c0_i32_0 = arith.constant 0 : i32
    return %arg0, %c0_i32 : i32, i32
  }
  func.func @transform_11(%arg0: i32) -> (i32, i32, i32) {
    %c0_i32 = arith.constant 0 : i32
    %c0_i32_0 = arith.constant 0 : i32
    %c0_i32_1 = arith.constant 0 : i32
    return %arg0, %c0_i32, %c0_i32_0 : i32, i32, i32
  }
}

</mosaic_0001>

<bundles_post_ra>
// kernel: tpu_custom_call.1
= control target key start
LH: loop header
LB: loop body
LE: loop exit
PB: predicated region body
PF: predicated region fallthrough
CT: control target
= control target key end

     0   :  { %17 = vsyncpa [#allocation3], 0  ;;  %v5662_v2 = vmov 0   ;;  %vm1252_vm0 = vcmask 130048   ;;  %s7336_s0 = inlined_call_operand.vmem [shape: f32[8,784], index: 0, kind: input, shape index: {}]   ;;  %s7337_s1 = inlined_call_operand.vmem [shape: bf16[784,512], index: 1, kind: input, shape index: {}]   ;;  %s7338_s2 = inlined_call_operand.vmem [shape: f32[1,512], index: 2, kind: input, shape index: {}]   ;;  %s7339_s3 = inlined_call_operand.vmem [shape: bf16[512,128], index: 3, kind: input, shape index: {}]   ;;  %s7340_s4 = inlined_call_operand.vmem [shape: f32[1,128], index: 4, kind: input, shape index: {}]   ;;  %s7341_s5 = inlined_call_operand.vmem [shape: bf16[128,512], index: 5, kind: input, shape index: {}]   ;;  %s7342_s6 = inlined_call_operand.vmem [shape: f32[1,512], index: 6, kind: input, shape index: {}]   ;;  %s7343_s7 = inlined_call_operand.vmem [shape: bf16[512,784], index: 7, kind: input, shape index: {}]   ;;  %s7344_s8 = inlined_call_operand.vmem [shape: f32[1,784], index: 8, kind: input, shape index: {}]   ;;  %s7345_s9 = inlined_call_operand.vmem [shape: f32[8,16], index: 9, kind: input, shape index: {}]   ;;  %s7346_s10 = inlined_call_operand.hbm [shape: bf16[8,784], index: 10, kind: output, shape index: {0}]   ;;  %s7347_s11 = inlined_call_operand.hbm [shape: f32[1,1,128], index: 11, kind: output, shape index: {1}]  }
   0x1   :  { %v4890_v0 = vld [vmem:[%s7337_s1 + $0x4] ss:$16 sps:$4 sm:$0xff]   ;;  %1411 = vmatprep.mubr.bf16.mxu1 %v5662_v2  ;;  %v4894_v3 = vld [vmem:[%s7337_s1] ss:$16 sps:$4 sm:$0xff]   ;;  %v4898_v6 = vld [vmem:[%s7337_s1 + $0x8] ss:$16 sps:$4 sm:$0xff]  }
   0x2   :  { %v4892_v1 = vld [vmem:[%s7337_s1 + $0x604] ss:$16 sps:$4 sm:$0xff]   ;;  %1256 = vmatprep.subr.bf16.mxu0 %v4890_v0  ;;  %v4895_v4 = vld [vmem:[%s7337_s1 + $0x600] ss:$16 sps:$4 sm:$0xff]   ;;  %v4900_v7 = vld [vmem:[%s7337_s1 + $0xc] ss:$16 sps:$4 sm:$0xff]  }
   0x3   :  { %1379 = vmatprep.subr.bf16.mxu1 %v4892_v1  ;;  %v4896_v5 = vld [vmem:[%s7337_s1 + $0x24] ss:$16 sps:$4 sm:$0xff]   ;;  %1257 = vmatpush1.bf16.msra.mxu0 %v4894_v3  ;;  %v4901_v8 = vld [vmem:[%s7337_s1 + $0x20] ss:$16 sps:$4 sm:$0xff]   ;;  %v4904_v12 = vld [vmem:[%s7337_s1 + $0x28] ss:$16 sps:$4 sm:$0xff]  }
   0x4   :  { %1380 = vmatpush1.bf16.msra.mxu1 %v4895_v4  ;;  %1258 = vmatprep.subr.bf16.mxu0 %v4896_v5  ;;  %v46_v9 = vld [vmem:[%s7336_s0 + $0x30] sm:$0xff]  ;;  %v4906_v13 = vld [vmem:[%s7337_s1 + $0x2c] ss:$16 sps:$4 sm:$0xff]   ;;  %v4910_v18 = vld [vmem:[%s7337_s1 + $0x48] ss:$16 sps:$4 sm:$0xff]  }
   0x5   :  { %1420 = vmatprep.subr.bf16.mxu1 %v4900_v7  ;;  %v5757_v10 = vpack.c.bf16 %v46_v9, %v46_v9  ;;  %v4902_v11 = vld [vmem:[%s7337_s1 + $0x44] ss:$16 sps:$4 sm:$0xff]   ;;  %v4907_v14 = vld [vmem:[%s7337_s1 + $0x40] ss:$16 sps:$4 sm:$0xff]   ;;  %v4912_v16 = vld [vmem:[%s7337_s1 + $0x4c] ss:$16 sps:$4 sm:$0xff]  }
   0x6   :  { %v4908_v15 = vld [vmem:[%s7337_s1 + $0x64] ss:$16 sps:$4 sm:$0xff]   ;;  %v4913_v17 = vld [vmem:[%s7337_s1 + $0x60] ss:$16 sps:$4 sm:$0xff]   ;;  %v4918_v20 = vld [vmem:[%s7337_s1 + $0x6c] ss:$16 sps:$4 sm:$0xff]  }
   0x7   :  { %1259 = vmatpush1.bf16.msra.mxu0 %v4901_v8  ;;  %4427 = vmatmul.mubr.msk.bf16.vlgmr.msra.gmra.mrb[0].mxu1 %vm1252_vm0, %v5757_v10  ;;  %v4914_v19 = vld [vmem:[%s7337_s1 + $0x84] ss:$16 sps:$4 sm:$0xff]   ;;  %v4916_v21 = vld [vmem:[%s7337_s1 + $0x68] ss:$16 sps:$4 sm:$0xff]   ;;  %v4919_v22 = vld [vmem:[%s7337_s1 + $0x80] ss:$16 sps:$4 sm:$0xff]  }
   0x8   :  { %1421 = vmatpush1.bf16.msra.mxu1 %v4898_v6  ;;  %1260 = vmatprep.subr.bf16.mxu0 %v4902_v11  ;;  %v4920_v23 = vld [vmem:[%s7337_s1 + $0xa4] ss:$16 sps:$4 sm:$0xff]   ;;  %v4924_v24 = vld [vmem:[%s7337_s1 + $0x8c] ss:$16 sps:$4 sm:$0xff]   ;;  %v4925_v25 = vld [vmem:[%s7337_s1 + $0xa0] ss:$16 sps:$4 sm:$0xff]  }
   0x9   :  { %1422 = vmatprep.subr.bf16.mxu1 %v4906_v13  ;;  %v4922_v26 = vld [vmem:[%s7337_s1 + $0x88] ss:$16 sps:$4 sm:$0xff]   ;;  %v4926_v27 = vld [vmem:[%s7337_s1 + $0xc4] ss:$16 sps:$4 sm:$0xff]   ;;  %v4930_v28 = vld [vmem:[%s7337_s1 + $0xac] ss:$16 sps:$4 sm:$0xff]  }
   0xa   :  { %v4928_v29 = vld [vmem:[%s7337_s1 + $0xa8] ss:$16 sps:$4 sm:$0xff]   ;;  %v4931_v30 = vld [vmem:[%s7337_s1 + $0xc0] ss:$16 sps:$4 sm:$0xff]   ;;  %v4932_v31 = vld [vmem:[%s7337_s1 + $0xe4] ss:$16 sps:$4 sm:$0xff]  }
   0xb   :  { %1261 = vmatpush1.bf16.msra.mxu0 %v4907_v14  ;;  %v4936_v32 = vld [vmem:[%s7337_s1 + $0xcc] ss:$16 sps:$4 sm:$0xff]   ;;  %v4937_v33 = vld [vmem:[%s7337_s1 + $0xe0] ss:$16 sps:$4 sm:$0xff]   ;;  %v4934_v34 = vld [vmem:[%s7337_s1 + $0xc8] ss:$16 sps:$4 sm:$0xff]  }
   0xc   :  { %1423 = vmatpush1.bf16.msra.mxu1 %v4904_v12  ;;  %1262 = vmatprep.subr.bf16.mxu0 %v4908_v15  ;;  %v4938_v35 = vld [vmem:[%s7337_s1 + $0x104] ss:$16 sps:$4 sm:$0xff]   ;;  %v4942_v36 = vld [vmem:[%s7337_s1 + $0xec] ss:$16 sps:$4 sm:$0xff]   ;;  %v4940_v37 = vld [vmem:[%s7337_s1 + $0xe8] ss:$16 sps:$4 sm:$0xff]  }
   0xd   :  { %1424 = vmatprep.subr.bf16.mxu1 %v4912_v16  ;;  %v4943_v38 = vld [vmem:[%s7337_s1 + $0x100] ss:$16 sps:$4 sm:$0xff]   ;;  %v4944_v39 = vld [vmem:[%s7337_s1 + $0x124] ss:$16 sps:$4 sm:$0xff]   ;;  %v4948_v40 = vld [vmem:[%s7337_s1 + $0x10c] ss:$16 sps:$4 sm:$0xff]  }
   0xe   :  { %v4949_v41 = vld [vmem:[%s7337_s1 + $0x120] ss:$16 sps:$4 sm:$0xff]   ;;  %v4946_v42 = vld [vmem:[%s7337_s1 + $0x108] ss:$16 sps:$4 sm:$0xff]   ;;  %v4950_v43 = vld [vmem:[%s7337_s1 + $0x144] ss:$16 sps:$4 sm:$0xff]  }
   0xf   :  { %1263 = vmatpush1.bf16.msra.mxu0 %v4913_v17  ;;  %v4954_v44 = vld [vmem:[%s7337_s1 + $0x12c] ss:$16 sps:$4 sm:$0xff]   ;;  %v4952_v45 = vld [vmem:[%s7337_s1 + $0x128] ss:$16 sps:$4 sm:$0xff]   ;;  %v4955_v46 = vld [vmem:[%s7337_s1 + $0x140] ss:$16 sps:$4 sm:$0xff]  }
  0x10   :  { %1425 = vmatpush1.bf16.msra.mxu1 %v4910_v18  ;;  %1264 = vmatprep.subr.bf16.mxu0 %v4914_v19  ;;  %v4956_v47 = vld [vmem:[%s7337_s1 + $0x164] ss:$16 sps:$4 sm:$0xff]   ;;  %v4960_v48 = vld [vmem:[%s7337_s1 + $0x14c] ss:$16 sps:$4 sm:$0xff]   ;;  %v4961_v50 = vld [vmem:[%s7337_s1 + $0x160] ss:$16 sps:$4 sm:$0xff]  }
  0x11   :  { %1426 = vmatprep.subr.bf16.mxu1 %v4918_v20  ;;  %v41_v49 = vld [vmem:[%s7336_s0 + $0x8] sm:$0xff]  ;;  %v4962_v53 = vld [vmem:[%s7337_s1 + $0x184] ss:$16 sps:$4 sm:$0xff]   ;;  %v4967_v56 = vld [vmem:[%s7337_s1 + $0x180] ss:$16 sps:$4 sm:$0xff]  }
  0x12   :  { %v48_v51 = vpack.c.bf16 %v41_v49, %v41_v49  ;;  %v4958_v52 = vld [vmem:[%s7337_s1 + $0x148] ss:$16 sps:$4 sm:$0xff]   ;;  %v4966_v54 = vld [vmem:[%s7337_s1 + $0x16c] ss:$16 sps:$4 sm:$0xff]   ;;  %v4968_v57 = vld [vmem:[%s7337_s1 + $0x1a4] ss:$16 sps:$4 sm:$0xff]  }
  0x13   :  { %1265 = vmatpush1.bf16.msra.mxu0 %v4919_v22  ;;  %v4964_v55 = vld [vmem:[%s7337_s1 + $0x168] ss:$16 sps:$4 sm:$0xff]   ;;  %v4972_v58 = vld [vmem:[%s7337_s1 + $0x18c] ss:$16 sps:$4 sm:$0xff]   ;;  %v4973_v60 = vld [vmem:[%s7337_s1 + $0x1a0] ss:$16 sps:$4 sm:$0xff]  }
  0x14   :  { %1427 = vmatpush1.bf16.msra.mxu1 %v4916_v21  ;;  %1266 = vmatprep.subr.bf16.mxu0 %v4920_v23  ;;  %v4970_v59 = vld [vmem:[%s7337_s1 + $0x188] ss:$16 sps:$4 sm:$0xff]   ;;  %v4974_v61 = vld [vmem:[%s7337_s1 + $0x1c4] ss:$16 sps:$4 sm:$0xff]   ;;  %v4978_v62 = vld [vmem:[%s7337_s1 + $0x1ac] ss:$16 sps:$4 sm:$0xff]  }
  0x15   :  { %1428 = vmatprep.subr.bf16.mxu1 %v4924_v24  ;;  %1288 = vmatprep.mubr.bf16.mxu0 %v48_v51  ;;  %v4976_v63 = vld [vmem:[%s7337_s1 + $0x1a8] ss:$16 sps:$4 sm:$0xff]   ;;  %v4979_v0 = vld [vmem:[%s7337_s1 + $0x1c0] ss:$16 sps:$4 sm:$0xff]   ;;  %v4980_v1 = vld [vmem:[%s7337_s1 + $0x1e4] ss:$16 sps:$4 sm:$0xff]  }
  0x16   :  { %1452 = vmatprep.mubr.bf16.mxu1 %v48_v51  ;;  %v4984_v3 = vld [vmem:[%s7337_s1 + $0x1cc] ss:$16 sps:$4 sm:$0xff]   ;;  %v4982_v4 = vld [vmem:[%s7337_s1 + $0x1c8] ss:$16 sps:$4 sm:$0xff]   ;;  %v4985_v5 = vld [vmem:[%s7337_s1 + $0x1e0] ss:$16 sps:$4 sm:$0xff]  }
  0x17   :  { %1267 = vmatpush1.bf16.msra.mxu0 %v4925_v25  ;;  %v40_v6 = vld [vmem:[%s7336_s0] sm:$0xff]  ;;  %v4991_v8 = vld [vmem:[%s7337_s1 + $0x1ec] ss:$16 sps:$4 sm:$0xff]   ;;  %v4989_v12 = vld [vmem:[%s7337_s1 + $0x1e8] ss:$16 sps:$4 sm:$0xff]  }
  0x18   :  { %1429 = vmatpush1.bf16.msra.mxu1 %v4922_v26  ;;  %1268 = vmatprep.subr.bf16.mxu0 %v4926_v27  ;;  %v4988_v7 = vld [vmem:[%s7337_s1 + $0x204] ss:$16 sps:$4 sm:$0xff]   ;;  %v47_v9 = vpack.c.bf16 %v40_v6, %v40_v6  ;;  %v4986_v11 = vld [vmem:[%s7337_s1 + $0x200] ss:$16 sps:$4 sm:$0xff]   ;;  %v4997_v14 = vld [vmem:[%s7337_s1 + $0x20c] ss:$16 sps:$4 sm:$0xff]  }
  0x19   :  { %1430 = vmatprep.subr.bf16.mxu1 %v4930_v28  ;;  %v4994_v13 = vld [vmem:[%s7337_s1 + $0x224] ss:$16 sps:$4 sm:$0xff]   ;;  %v4992_v15 = vld [vmem:[%s7337_s1 + $0x220] ss:$16 sps:$4 sm:$0xff]   ;;  %v4995_v16 = vld [vmem:[%s7337_s1 + $0x208] ss:$16 sps:$4 sm:$0xff]  }
  0x1a   :  { %v5000_v17 = vld [vmem:[%s7337_s1 + $0x244] ss:$16 sps:$4 sm:$0xff]   ;;  %v5003_v18 = vld [vmem:[%s7337_s1 + $0x22c] ss:$16 sps:$4 sm:$0xff]   ;;  %v4998_v19 = vld [vmem:[%s7337_s1 + $0x240] ss:$16 sps:$4 sm:$0xff]  }
  0x1b   :  { %1269 = vmatpush1.bf16.msra.mxu0 %v4931_v30  ;;  %v5001_v20 = vld [vmem:[%s7337_s1 + $0x228] ss:$16 sps:$4 sm:$0xff]   ;;  %v5006_v21 = vld [vmem:[%s7337_s1 + $0x264] ss:$16 sps:$4 sm:$0xff]   ;;  %v5009_v22 = vld [vmem:[%s7337_s1 + $0x24c] ss:$16 sps:$4 sm:$0xff]  }
  0x1c   :  { %1431 = vmatpush1.bf16.msra.mxu1 %v4928_v29  ;;  %1270 = vmatprep.subr.bf16.mxu0 %v4932_v31  ;;  %v5004_v23 = vld [vmem:[%s7337_s1 + $0x260] ss:$16 sps:$4 sm:$0xff]   ;;  %v5007_v24 = vld [vmem:[%s7337_s1 + $0x248] ss:$16 sps:$4 sm:$0xff]   ;;  %v5012_v25 = vld [vmem:[%s7337_s1 + $0x284] ss:$16 sps:$4 sm:$0xff]  }
  0x1d   :  { %1432 = vmatprep.subr.bf16.mxu1 %v4936_v32  ;;  %v5015_v26 = vld [vmem:[%s7337_s1 + $0x26c] ss:$16 sps:$4 sm:$0xff]   ;;  %v5010_v27 = vld [vmem:[%s7337_s1 + $0x280] ss:$16 sps:$4 sm:$0xff]   ;;  %v5013_v28 = vld [vmem:[%s7337_s1 + $0x268] ss:$16 sps:$4 sm:$0xff]  }
  0x1e   :  { %v5018_v29 = vld [vmem:[%s7337_s1 + $0x2a4] ss:$16 sps:$4 sm:$0xff]   ;;  %v5021_v30 = vld [vmem:[%s7337_s1 + $0x28c] ss:$16 sps:$4 sm:$0xff]   ;;  %v5016_v31 = vld [vmem:[%s7337_s1 + $0x2a0] ss:$16 sps:$4 sm:$0xff]  }
  0x1f   :  { %1271 = vmatpush1.bf16.msra.mxu0 %v4937_v33  ;;  %v5019_v32 = vld [vmem:[%s7337_s1 + $0x288] ss:$16 sps:$4 sm:$0xff]   ;;  %v5024_v33 = vld [vmem:[%s7337_s1 + $0x2c4] ss:$16 sps:$4 sm:$0xff]   ;;  %v5040_v49 = vld [vmem:[%s7337_s1 + $0x320] ss:$16 sps:$4 sm:$0xff]  }
  0x20   :  { %1433 = vmatpush1.bf16.msra.mxu1 %v4934_v34  ;;  %1272 = vmatprep.subr.bf16.mxu0 %v4938_v35  ;;  %v5027_v34 = vld [vmem:[%s7337_s1 + $0x2ac] ss:$16 sps:$4 sm:$0xff]   ;;  %v5048_v51 = vld [vmem:[%s7337_s1 + $0x344] ss:$16 sps:$4 sm:$0xff]   ;;  %v5070_v6 = vld [vmem:[%s7337_s1 + $0x3c0] ss:$16 sps:$4 sm:$0xff]  }
  0x21   :  { %1434 = vmatprep.subr.bf16.mxu1 %v4942_v36  ;;  %v43_v35 = vld [vmem:[%s7336_s0 + $0x18] sm:$0xff] }
  0x22   :  { %v50_v36 = vpack.c.bf16 %v43_v35, %v43_v35  ;;  %v5111_v35 = vld [vmem:[%s7337_s1 + $0x46c] ss:$16 sps:$4 sm:$0xff]  }
  0x23   :  { %1273 = vmatpush1.bf16.msra.mxu0 %v4943_v38  ;;  %v5025_v38 = vld [vmem:[%s7337_s1 + $0x2a8] ss:$16 sps:$4 sm:$0xff]  }
  0x24   :  { %1435 = vmatpush1.bf16.msra.mxu1 %v4940_v37  ;;  %1274 = vmatprep.subr.bf16.mxu0 %v4944_v39  ;;  %v5022_v37 = vld [vmem:[%s7337_s1 + $0x2c0] ss:$16 sps:$4 sm:$0xff]   ;;  %v5030_v39 = vld [vmem:[%s7337_s1 + $0x2e4] ss:$16 sps:$4 sm:$0xff]  }
  0x25   :  { %1436 = vmatprep.subr.bf16.mxu1 %v4948_v40  ;;  %v5033_v40 = vld [vmem:[%s7337_s1 + $0x2cc] ss:$16 sps:$4 sm:$0xff]  }
  0x27   :  { %1275 = vmatpush1.bf16.msra.mxu0 %v4949_v41  ;;  %v5028_v41 = vld [vmem:[%s7337_s1 + $0x2e0] ss:$16 sps:$4 sm:$0xff]  }
  0x28   :  { %1437 = vmatpush1.bf16.msra.mxu1 %v4946_v42  ;;  %1276 = vmatprep.subr.bf16.mxu0 %v4950_v43  ;;  %v5031_v42 = vld [vmem:[%s7337_s1 + $0x2c8] ss:$16 sps:$4 sm:$0xff]   ;;  %v5036_v43 = vld [vmem:[%s7337_s1 + $0x304] ss:$16 sps:$4 sm:$0xff]  }
  0x29   :  { %1438 = vmatprep.subr.bf16.mxu1 %v4954_v44  ;;  %v5039_v44 = vld [vmem:[%s7337_s1 + $0x2ec] ss:$16 sps:$4 sm:$0xff]  }
  0x2b   :  { %1277 = vmatpush1.bf16.msra.mxu0 %v4955_v46  ;;  %v5037_v46 = vld [vmem:[%s7337_s1 + $0x2e8] ss:$16 sps:$4 sm:$0xff]  }
  0x2c   :  { %1439 = vmatpush1.bf16.msra.mxu1 %v4952_v45  ;;  %1278 = vmatprep.subr.bf16.mxu0 %v4956_v47  ;;  %v5034_v45 = vld [vmem:[%s7337_s1 + $0x300] ss:$16 sps:$4 sm:$0xff]   ;;  %v5042_v47 = vld [vmem:[%s7337_s1 + $0x324] ss:$16 sps:$4 sm:$0xff]  }
  0x2d   :  { %1440 = vmatprep.subr.bf16.mxu1 %v4960_v48  ;;  %v5045_v48 = vld [vmem:[%s7337_s1 + $0x30c] ss:$16 sps:$4 sm:$0xff]  }
  0x2f   :  { %1279 = vmatpush1.bf16.msra.mxu0 %v4961_v50  ;;  %v5043_v50 = vld [vmem:[%s7337_s1 + $0x308] ss:$16 sps:$4 sm:$0xff]  }
  0x30   :  { %1441 = vmatpush1.bf16.msra.mxu1 %v4958_v52  ;;  %1280 = vmatprep.subr.bf16.mxu0 %v4962_v53  ;;  %v5051_v52 = vld [vmem:[%s7337_s1 + $0x32c] ss:$16 sps:$4 sm:$0xff]   ;;  %v5046_v53 = vld [vmem:[%s7337_s1 + $0x340] ss:$16 sps:$4 sm:$0xff]  }
  0x31   :  { %1442 = vmatprep.subr.bf16.mxu1 %v4966_v54  ;;  %v5049_v54 = vld [vmem:[%s7337_s1 + $0x328] ss:$16 sps:$4 sm:$0xff]  }
  0x33   :  { %1281 = vmatpush1.bf16.msra.mxu0 %v4967_v56  ;;  %v5057_v56 = vld [vmem:[%s7337_s1 + $0x34c] ss:$16 sps:$4 sm:$0xff]  }
  0x34   :  { %1443 = vmatpush1.bf16.msra.mxu1 %v4964_v55  ;;  %1282 = vmatprep.subr.bf16.mxu0 %v4968_v57  ;;  %v5054_v55 = vld [vmem:[%s7337_s1 + $0x364] ss:$16 sps:$4 sm:$0xff]   ;;  %v5052_v57 = vld [vmem:[%s7337_s1 + $0x360] ss:$16 sps:$4 sm:$0xff]  }
  0x35   :  { %1444 = vmatprep.subr.bf16.mxu1 %v4972_v58  ;;  %v5055_v58 = vld [vmem:[%s7337_s1 + $0x348] ss:$16 sps:$4 sm:$0xff]  }
  0x37   :  { %1283 = vmatpush1.bf16.msra.mxu0 %v4973_v60  ;;  %v5063_v60 = vld [vmem:[%s7337_s1 + $0x36c] ss:$16 sps:$4 sm:$0xff]  }
  0x38   :  { %1445 = vmatpush1.bf16.msra.mxu1 %v4970_v59  ;;  %1284 = vmatprep.subr.bf16.mxu0 %v4974_v61  ;;  %v5060_v59 = vld [vmem:[%s7337_s1 + $0x384] ss:$16 sps:$4 sm:$0xff]   ;;  %v5058_v61 = vld [vmem:[%s7337_s1 + $0x380] ss:$16 sps:$4 sm:$0xff]  }
  0x39   :  { %1446 = vmatprep.subr.bf16.mxu1 %v4978_v62  ;;  %v5061_v62 = vld [vmem:[%s7337_s1 + $0x368] ss:$16 sps:$4 sm:$0xff]  }
  0x3b   :  { %1285 = vmatpush1.bf16.msra.mxu0 %v4979_v0  ;;  %v5069_v0 = vld [vmem:[%s7337_s1 + $0x38c] ss:$16 sps:$4 sm:$0xff]  }
  0x3c   :  { %1447 = vmatpush1.bf16.msra.mxu1 %v4976_v63  ;;  %1286 = vmatprep.subr.bf16.mxu0 %v4980_v1  ;;  %v5066_v63 = vld [vmem:[%s7337_s1 + $0x3a4] ss:$16 sps:$4 sm:$0xff]   ;;  %v5064_v1 = vld [vmem:[%s7337_s1 + $0x3a0] ss:$16 sps:$4 sm:$0xff]  }
  0x3d   :  { %1448 = vmatprep.subr.bf16.mxu1 %v4984_v3  ;;  %v5067_v3 = vld [vmem:[%s7337_s1 + $0x388] ss:$16 sps:$4 sm:$0xff]  }
  0x3f   :  { %1287 = vmatpush1.bf16.msra.mxu0 %v4985_v5  ;;  %v5075_v5 = vld [vmem:[%s7337_s1 + $0x3ac] ss:$16 sps:$4 sm:$0xff]  }
  0x40   :  { %1449 = vmatpush1.bf16.msra.mxu1 %v4982_v4  ;;  %1297 = vmatprep.subr.bf16.mxu0 %v4988_v7  ;;  %v5072_v4 = vld [vmem:[%s7337_s1 + $0x3c4] ss:$16 sps:$4 sm:$0xff]   ;;  %v5073_v7 = vld [vmem:[%s7337_s1 + $0x3a8] ss:$16 sps:$4 sm:$0xff]  }
  0x41   :  { %1450 = vmatprep.subr.bf16.mxu1 %v4991_v8  ;;  %v5078_v8 = vld [vmem:[%s7337_s1 + $0x3e4] ss:$16 sps:$4 sm:$0xff]  }
  0x42   :  { %1289 = vmatmul.mubr.bf16.vlgmr.msra.gmra.mrb[0].mxu0 %v47_v9 }
  0x43   :  { %1298 = vmatpush1.bf16.msra.mxu0 %v4986_v11  ;;  %1329 = vmatprep.mubr.bf16.mxu0 %v50_v36  ;;  %v5076_v11 = vld [vmem:[%s7337_s1 + $0x3e0] ss:$16 sps:$4 sm:$0xff]  }
  0x44   :  { %1451 = vmatpush1.bf16.msra.mxu1 %v4989_v12  ;;  %1299 = vmatprep.subr.bf16.mxu0 %v4994_v13  ;;  %v42_v12 = vld [vmem:[%s7336_s0 + $0x10] sm:$0xff]  ;;  %v5079_v13 = vld [vmem:[%s7337_s1 + $0x3c8] ss:$16 sps:$4 sm:$0xff]  }
  0x45   :  { %1461 = vmatprep.subr.bf16.mxu1 %v4997_v14  ;;  %v5084_v14 = vld [vmem:[%s7337_s1 + $0x404] ss:$16 sps:$4 sm:$0xff]  }
  0x47   :  { %1300 = vmatpush1.bf16.msra.mxu0 %v4992_v15  ;;  %1453 = vmatmul.mubr.bf16.vlgmr.msra.gmra.mrb[4].mxu1 %v47_v9  ;;  %v5081_v9 = vld [vmem:[%s7337_s1 + $0x3cc] ss:$16 sps:$4 sm:$0xff]  }
  0x48   :  { %1462 = vmatpush1.bf16.msra.mxu1 %v4995_v16  ;;  %1301 = vmatprep.subr.bf16.mxu0 %v5000_v17  ;;  %v5087_v15 = vld [vmem:[%s7337_s1 + $0x3ec] ss:$16 sps:$4 sm:$0xff]   ;;  %v49_v16 = vpack.c.bf16 %v42_v12, %v42_v12  ;;  %v5082_v17 = vld [vmem:[%s7337_s1 + $0x400] ss:$16 sps:$4 sm:$0xff]  }
  0x49   :  { %1463 = vmatprep.subr.bf16.mxu1 %v5003_v18  ;;  %1493 = vmatprep.mubr.bf16.mxu1 %v50_v36  ;;  %v5085_v18 = vld [vmem:[%s7337_s1 + $0x3e8] ss:$16 sps:$4 sm:$0xff]   ;;  %v5171_v12 = vld [vmem:[%s7337_s1 + $0x5ac] ss:$16 sps:$4 sm:$0xff]  }
  0x4a   :  { %v5109_v36 = vld [vmem:[%s7337_s1 + $0x468] ss:$16 sps:$4 sm:$0xff]  }
  0x4b   :  { %1302 = vmatpush1.bf16.msra.mxu0 %v4998_v19  ;;  %v5090_v19 = vld [vmem:[%s7337_s1 + $0x424] ss:$16 sps:$4 sm:$0xff]  }
  0x4c   :  { %1464 = vmatpush1.bf16.msra.mxu1 %v5001_v20  ;;  %1303 = vmatprep.subr.bf16.mxu0 %v5006_v21  ;;  %v45_v20 = vld [vmem:[%s7336_s0 + $0x28] sm:$0xff] }
  0x4d   :  { %1465 = vmatprep.subr.bf16.mxu1 %v5009_v22  ;;  %v5093_v21 = vld [vmem:[%s7337_s1 + $0x40c] ss:$16 sps:$4 sm:$0xff]   ;;  %v52_v22 = vpack.c.bf16 %v45_v20, %v45_v20  ;;  %v5184_v20 = vld [vmem:[%s7339_s3 + $0x40] sm:$0xff]  }
  0x4f   :  { %1304 = vmatpush1.bf16.msra.mxu0 %v5004_v23  ;;  %v5088_v23 = vld [vmem:[%s7337_s1 + $0x420] ss:$16 sps:$4 sm:$0xff]  }
  0x50   :  { %1466 = vmatpush1.bf16.msra.mxu1 %v5007_v24  ;;  %1305 = vmatprep.subr.bf16.mxu0 %v5012_v25  ;;  %v5091_v24 = vld [vmem:[%s7337_s1 + $0x408] ss:$16 sps:$4 sm:$0xff]   ;;  %v5096_v25 = vld [vmem:[%s7337_s1 + $0x444] ss:$16 sps:$4 sm:$0xff]  }
  0x51   :  { %1467 = vmatprep.subr.bf16.mxu1 %v5015_v26  ;;  %v5099_v26 = vld [vmem:[%s7337_s1 + $0x42c] ss:$16 sps:$4 sm:$0xff]  }
  0x53   :  { %1306 = vmatpush1.bf16.msra.mxu0 %v5010_v27  ;;  %v5094_v27 = vld [vmem:[%s7337_s1 + $0x440] ss:$16 sps:$4 sm:$0xff]  }
  0x54   :  { %1468 = vmatpush1.bf16.msra.mxu1 %v5013_v28  ;;  %1307 = vmatprep.subr.bf16.mxu0 %v5018_v29  ;;  %v5097_v28 = vld [vmem:[%s7337_s1 + $0x428] ss:$16 sps:$4 sm:$0xff]   ;;  %v5102_v29 = vld [vmem:[%s7337_s1 + $0x464] ss:$16 sps:$4 sm:$0xff]  }
  0x55   :  { %1469 = vmatprep.subr.bf16.mxu1 %v5021_v30  ;;  %v5105_v30 = vld [vmem:[%s7337_s1 + $0x44c] ss:$16 sps:$4 sm:$0xff]  }
  0x57   :  { %1308 = vmatpush1.bf16.msra.mxu0 %v5016_v31  ;;  %v5100_v31 = vld [vmem:[%s7337_s1 + $0x460] ss:$16 sps:$4 sm:$0xff]  }
  0x58   :  { %1470 = vmatpush1.bf16.msra.mxu1 %v5019_v32  ;;  %1309 = vmatprep.subr.bf16.mxu0 %v5024_v33  ;;  %v5103_v32 = vld [vmem:[%s7337_s1 + $0x448] ss:$16 sps:$4 sm:$0xff]   ;;  %v5108_v33 = vld [vmem:[%s7337_s1 + $0x484] ss:$16 sps:$4 sm:$0xff]  }
  0x59   :  { %1471 = vmatprep.subr.bf16.mxu1 %v5027_v34  ;;  %v5106_v34 = vld [vmem:[%s7337_s1 + $0x480] ss:$16 sps:$4 sm:$0xff]  }
  0x5b   :  { %1310 = vmatpush1.bf16.msra.mxu0 %v5022_v37  ;;  %v5114_v37 = vld [vmem:[%s7337_s1 + $0x4a4] ss:$16 sps:$4 sm:$0xff]  }
  0x5c   :  { %1472 = vmatpush1.bf16.msra.mxu1 %v5025_v38  ;;  %1311 = vmatprep.subr.bf16.mxu0 %v5030_v39  ;;  %v5117_v38 = vld [vmem:[%s7337_s1 + $0x48c] ss:$16 sps:$4 sm:$0xff]   ;;  %v5112_v39 = vld [vmem:[%s7337_s1 + $0x4a0] ss:$16 sps:$4 sm:$0xff]  }
  0x5d   :  { %1473 = vmatprep.subr.bf16.mxu1 %v5033_v40  ;;  %v5115_v40 = vld [vmem:[%s7337_s1 + $0x488] ss:$16 sps:$4 sm:$0xff]  }
  0x5f   :  { %1312 = vmatpush1.bf16.msra.mxu0 %v5028_v41  ;;  %v5120_v41 = vld [vmem:[%s7337_s1 + $0x4c4] ss:$16 sps:$4 sm:$0xff]  }
  0x60   :  { %1474 = vmatpush1.bf16.msra.mxu1 %v5031_v42  ;;  %1313 = vmatprep.subr.bf16.mxu0 %v5036_v43  ;;  %v5123_v42 = vld [vmem:[%s7337_s1 + $0x4ac] ss:$16 sps:$4 sm:$0xff]   ;;  %v5118_v43 = vld [vmem:[%s7337_s1 + $0x4c0] ss:$16 sps:$4 sm:$0xff]  }
  0x61   :  { %1475 = vmatprep.subr.bf16.mxu1 %v5039_v44  ;;  %v5121_v44 = vld [vmem:[%s7337_s1 + $0x4a8] ss:$16 sps:$4 sm:$0xff]  }
  0x63   :  { %1314 = vmatpush1.bf16.msra.mxu0 %v5034_v45  ;;  %v5126_v45 = vld [vmem:[%s7337_s1 + $0x4e4] ss:$16 sps:$4 sm:$0xff]  }
  0x64   :  { %1476 = vmatpush1.bf16.msra.mxu1 %v5037_v46  ;;  %1315 = vmatprep.subr.bf16.mxu0 %v5042_v47  ;;  %v5129_v46 = vld [vmem:[%s7337_s1 + $0x4cc] ss:$16 sps:$4 sm:$0xff]   ;;  %v5124_v47 = vld [vmem:[%s7337_s1 + $0x4e0] ss:$16 sps:$4 sm:$0xff]  }
  0x65   :  { %1477 = vmatprep.subr.bf16.mxu1 %v5045_v48  ;;  %v5127_v48 = vld [vmem:[%s7337_s1 + $0x4c8] ss:$16 sps:$4 sm:$0xff]  }
  0x67   :  { %1316 = vmatpush1.bf16.msra.mxu0 %v5040_v49  ;;  %v5132_v49 = vld [vmem:[%s7337_s1 + $0x504] ss:$16 sps:$4 sm:$0xff]  }
  0x68   :  { %1478 = vmatpush1.bf16.msra.mxu1 %v5043_v50  ;;  %1317 = vmatprep.subr.bf16.mxu0 %v5048_v51  ;;  %v5135_v50 = vld [vmem:[%s7337_s1 + $0x4ec] ss:$16 sps:$4 sm:$0xff]   ;;  %v5130_v51 = vld [vmem:[%s7337_s1 + $0x500] ss:$16 sps:$4 sm:$0xff]  }
  0x69   :  { %1479 = vmatprep.subr.bf16.mxu1 %v5051_v52  ;;  %v5133_v52 = vld [vmem:[%s7337_s1 + $0x4e8] ss:$16 sps:$4 sm:$0xff]  }
  0x6b   :  { %1318 = vmatpush1.bf16.msra.mxu0 %v5046_v53  ;;  %v5138_v53 = vld [vmem:[%s7337_s1 + $0x524] ss:$16 sps:$4 sm:$0xff]  }
  0x6c   :  { %1480 = vmatpush1.bf16.msra.mxu1 %v5049_v54  ;;  %1319 = vmatprep.subr.bf16.mxu0 %v5054_v55  ;;  %v5141_v54 = vld [vmem:[%s7337_s1 + $0x50c] ss:$16 sps:$4 sm:$0xff]   ;;  %v5136_v55 = vld [vmem:[%s7337_s1 + $0x520] ss:$16 sps:$4 sm:$0xff]  }
  0x6d   :  { %1481 = vmatprep.subr.bf16.mxu1 %v5057_v56  ;;  %v5139_v56 = vld [vmem:[%s7337_s1 + $0x508] ss:$16 sps:$4 sm:$0xff]  }
  0x6f   :  { %1320 = vmatpush1.bf16.msra.mxu0 %v5052_v57  ;;  %v5144_v57 = vld [vmem:[%s7337_s1 + $0x544] ss:$16 sps:$4 sm:$0xff]  }
  0x70   :  { %1482 = vmatpush1.bf16.msra.mxu1 %v5055_v58  ;;  %1321 = vmatprep.subr.bf16.mxu0 %v5060_v59  ;;  %v5147_v58 = vld [vmem:[%s7337_s1 + $0x52c] ss:$16 sps:$4 sm:$0xff]   ;;  %v5142_v59 = vld [vmem:[%s7337_s1 + $0x540] ss:$16 sps:$4 sm:$0xff]  }
  0x71   :  { %1483 = vmatprep.subr.bf16.mxu1 %v5063_v60  ;;  %v5145_v60 = vld [vmem:[%s7337_s1 + $0x528] ss:$16 sps:$4 sm:$0xff]  }
  0x73   :  { %1322 = vmatpush1.bf16.msra.mxu0 %v5058_v61  ;;  %v5150_v61 = vld [vmem:[%s7337_s1 + $0x564] ss:$16 sps:$4 sm:$0xff]  }
  0x74   :  { %1484 = vmatpush1.bf16.msra.mxu1 %v5061_v62  ;;  %1323 = vmatprep.subr.bf16.mxu0 %v5066_v63  ;;  %v5153_v62 = vld [vmem:[%s7337_s1 + $0x54c] ss:$16 sps:$4 sm:$0xff]   ;;  %v5148_v63 = vld [vmem:[%s7337_s1 + $0x560] ss:$16 sps:$4 sm:$0xff]  }
  0x75   :  { %1485 = vmatprep.subr.bf16.mxu1 %v5069_v0  ;;  %v5151_v0 = vld [vmem:[%s7337_s1 + $0x548] ss:$16 sps:$4 sm:$0xff]  }
  0x77   :  { %1324 = vmatpush1.bf16.msra.mxu0 %v5064_v1  ;;  %v5156_v1 = vld [vmem:[%s7337_s1 + $0x584] ss:$16 sps:$4 sm:$0xff]  }
  0x78   :  { %1486 = vmatpush1.bf16.msra.mxu1 %v5067_v3  ;;  %1325 = vmatprep.subr.bf16.mxu0 %v5072_v4  ;;  %v5159_v3 = vld [vmem:[%s7337_s1 + $0x56c] ss:$16 sps:$4 sm:$0xff]   ;;  %v5154_v4 = vld [vmem:[%s7337_s1 + $0x580] ss:$16 sps:$4 sm:$0xff]  }
  0x79   :  { %1487 = vmatprep.subr.bf16.mxu1 %v5075_v5  ;;  %v5157_v5 = vld [vmem:[%s7337_s1 + $0x568] ss:$16 sps:$4 sm:$0xff]  }
  0x7b   :  { %1326 = vmatpush1.bf16.msra.mxu0 %v5070_v6  ;;  %v5162_v6 = vld [vmem:[%s7337_s1 + $0x5a4] ss:$16 sps:$4 sm:$0xff]  }
  0x7c   :  { %1488 = vmatpush1.bf16.msra.mxu1 %v5073_v7  ;;  %1327 = vmatprep.subr.bf16.mxu0 %v5078_v8  ;;  %v5165_v7 = vld [vmem:[%s7337_s1 + $0x58c] ss:$16 sps:$4 sm:$0xff]   ;;  %v5160_v8 = vld [vmem:[%s7337_s1 + $0x5a0] ss:$16 sps:$4 sm:$0xff]  }
  0x7d   :  { %1489 = vmatprep.subr.bf16.mxu1 %v5081_v9  ;;  %v5163_v9 = vld [vmem:[%s7337_s1 + $0x588] ss:$16 sps:$4 sm:$0xff]  }
  0x7f   :  { %1328 = vmatpush1.bf16.msra.mxu0 %v5076_v11  ;;  %v5168_v11 = vld [vmem:[%s7337_s1 + $0x5c4] ss:$16 sps:$4 sm:$0xff]  }
  0x80   :  { %1490 = vmatpush1.bf16.msra.mxu1 %v5079_v13  ;;  %1338 = vmatprep.subr.bf16.mxu0 %v5084_v14  ;;  %v5166_v13 = vld [vmem:[%s7337_s1 + $0x5c0] ss:$16 sps:$4 sm:$0xff]   ;;  %v5169_v14 = vld [vmem:[%s7337_s1 + $0x5a8] ss:$16 sps:$4 sm:$0xff]  }
  0x81   :  { %1491 = vmatprep.subr.bf16.mxu1 %v5087_v15  ;;  %v5174_v15 = vld [vmem:[%s7337_s1 + $0x5e4] ss:$16 sps:$4 sm:$0xff]  }
  0x82   :  { %1330 = vmatmul.mubr.bf16.vlgmr.msra.gmra.mrb[0].mxu0 %v49_v16 }
  0x83   :  { %1339 = vmatpush1.bf16.msra.mxu0 %v5082_v17  ;;  %1370 = vmatprep.mubr.bf16.mxu0 %v52_v22  ;;  %v5172_v17 = vld [vmem:[%s7337_s1 + $0x5e0] ss:$16 sps:$4 sm:$0xff]  }
  0x84   :  { %1492 = vmatpush1.bf16.msra.mxu1 %v5085_v18  ;;  %1340 = vmatprep.subr.bf16.mxu0 %v5090_v19  ;;  %v44_v18 = vld [vmem:[%s7336_s0 + $0x20] sm:$0xff]  ;;  %v5175_v19 = vld [vmem:[%s7337_s1 + $0x5c8] ss:$16 sps:$4 sm:$0xff]  }
  0x85   :  { %1502 = vmatprep.subr.bf16.mxu1 %v5093_v21  ;;  %v5180_v21 = vld [vmem:[%s7337_s1 + $0x5ec] ss:$16 sps:$4 sm:$0xff]  }
  0x87   :  { %1341 = vmatpush1.bf16.msra.mxu0 %v5088_v23  ;;  %1494 = vmatmul.mubr.bf16.vlgmr.msra.gmra.mrb[4].mxu1 %v49_v16  ;;  %v5177_v16 = vld [vmem:[%s7337_s1 + $0x5cc] ss:$16 sps:$4 sm:$0xff]   ;;  %v51_v23 = vpack.c.bf16 %v44_v18, %v44_v18 }
  0x88   :  { %1503 = vmatpush1.bf16.msra.mxu1 %v5091_v24  ;;  %1342 = vmatprep.subr.bf16.mxu0 %v5096_v25  ;;  %v5178_v24 = vld [vmem:[%s7337_s1 + $0x5e8] ss:$16 sps:$4 sm:$0xff]  }
  0x89   :  { %1504 = vmatprep.subr.bf16.mxu1 %v5099_v26  ;;  %1534 = vmatprep.mubr.bf16.mxu1 %v52_v22  ;;  %v5185_v22 = vld [vmem:[%s7339_s3] sm:$0xff]   ;;  %v5186_v25 = vld [vmem:[%s7339_s3 + $0x48] sm:$0xff]  }
  0x8a   :  { %v5183_v26 = vld [vmem:[%s7337_s1 + $0x60c] ss:$16 sps:$4 sm:$0xff]  }
  0x8b   :  { %1343 = vmatpush1.bf16.msra.mxu0 %v5094_v27  ;;  %v5187_v27 = vld [vmem:[%s7339_s3 + $0x8] sm:$0xff]  }
  0x8c   :  { %1505 = vmatpush1.bf16.msra.mxu1 %v5097_v28  ;;  %1344 = vmatprep.subr.bf16.mxu0 %v5102_v29  ;;  %v5181_v28 = vld [vmem:[%s7337_s1 + $0x608] ss:$16 sps:$4 sm:$0xff]   ;;  %v5188_v29 = vld [vmem:[%s7339_s3 + $0x50] sm:$0xff]  }
  0x8d   :  { %1506 = vmatprep.subr.bf16.mxu1 %v5105_v30  ;;  %v5189_v30 = vld [vmem:[%s7339_s3 + $0x10] sm:$0xff]  }
  0x8f   :  { %1345 = vmatpush1.bf16.msra.mxu0 %v5100_v31  ;;  %v5190_v31 = vld [vmem:[%s7339_s3 + $0x58] sm:$0xff]  }
  0x90   :  { %1507 = vmatpush1.bf16.msra.mxu1 %v5103_v32  ;;  %1346 = vmatprep.subr.bf16.mxu0 %v5108_v33  ;;  %v5191_v32 = vld [vmem:[%s7339_s3 + $0x18] sm:$0xff]   ;;  %v5192_v33 = vld [vmem:[%s7339_s3 + $0x60] sm:$0xff]  }
  0x91   :  { %1508 = vmatprep.subr.bf16.mxu1 %v5111_v35  ;;  %v5194_v35 = vld [vmem:[%s7339_s3 + $0x68] sm:$0xff]  }
  0x93   :  { %1347 = vmatpush1.bf16.msra.mxu0 %v5106_v34  ;;  %v5193_v34 = vld [vmem:[%s7339_s3 + $0x20] sm:$0xff]  }
  0x94   :  { %1509 = vmatpush1.bf16.msra.mxu1 %v5109_v36  ;;  %1348 = vmatprep.subr.bf16.mxu0 %v5114_v37  ;;  %v5195_v36 = vld [vmem:[%s7339_s3 + $0x28] sm:$0xff]  }
  0x95   :  { %1510 = vmatprep.subr.bf16.mxu1 %v5117_v38 }
  0x97   :  { %1349 = vmatpush1.bf16.msra.mxu0 %v5112_v39 }
  0x98   :  { %1511 = vmatpush1.bf16.msra.mxu1 %v5115_v40  ;;  %1350 = vmatprep.subr.bf16.mxu0 %v5120_v41 }
  0x99   :  { %1512 = vmatprep.subr.bf16.mxu1 %v5123_v42 }
  0x9b   :  { %1351 = vmatpush1.bf16.msra.mxu0 %v5118_v43 }
  0x9c   :  { %1513 = vmatpush1.bf16.msra.mxu1 %v5121_v44  ;;  %1352 = vmatprep.subr.bf16.mxu0 %v5126_v45 }
  0x9d   :  { %1514 = vmatprep.subr.bf16.mxu1 %v5129_v46 }
  0x9f   :  { %1353 = vmatpush1.bf16.msra.mxu0 %v5124_v47 }
  0xa0   :  { %1515 = vmatpush1.bf16.msra.mxu1 %v5127_v48  ;;  %1354 = vmatprep.subr.bf16.mxu0 %v5132_v49 }
  0xa1   :  { %1516 = vmatprep.subr.bf16.mxu1 %v5135_v50 }
  0xa3   :  { %1355 = vmatpush1.bf16.msra.mxu0 %v5130_v51 }
  0xa4   :  { %1517 = vmatpush1.bf16.msra.mxu1 %v5133_v52  ;;  %1356 = vmatprep.subr.bf16.mxu0 %v5138_v53 }
  0xa5   :  { %1518 = vmatprep.subr.bf16.mxu1 %v5141_v54 }
  0xa7   :  { %1357 = vmatpush1.bf16.msra.mxu0 %v5136_v55 }
  0xa8   :  { %1519 = vmatpush1.bf16.msra.mxu1 %v5139_v56  ;;  %1358 = vmatprep.subr.bf16.mxu0 %v5144_v57 }
  0xa9   :  { %1520 = vmatprep.subr.bf16.mxu1 %v5147_v58 }
  0xab   :  { %1359 = vmatpush1.bf16.msra.mxu0 %v5142_v59 }
  0xac   :  { %1521 = vmatpush1.bf16.msra.mxu1 %v5145_v60  ;;  %1360 = vmatprep.subr.bf16.mxu0 %v5150_v61 }
  0xad   :  { %1522 = vmatprep.subr.bf16.mxu1 %v5153_v62 }
  0xaf   :  { %1361 = vmatpush1.bf16.msra.mxu0 %v5148_v63 }
  0xb0   :  { %1523 = vmatpush1.bf16.msra.mxu1 %v5151_v0  ;;  %1362 = vmatprep.subr.bf16.mxu0 %v5156_v1 }
  0xb1   :  { %1524 = vmatprep.subr.bf16.mxu1 %v5159_v3 }
  0xb3   :  { %1363 = vmatpush1.bf16.msra.mxu0 %v5154_v4 }
  0xb4   :  { %1525 = vmatpush1.bf16.msra.mxu1 %v5157_v5  ;;  %1364 = vmatprep.subr.bf16.mxu0 %v5162_v6 }
  0xb5   :  { %1526 = vmatprep.subr.bf16.mxu1 %v5165_v7 }
  0xb7   :  { %1365 = vmatpush1.bf16.msra.mxu0 %v5160_v8 }
  0xb8   :  { %1527 = vmatpush1.bf16.msra.mxu1 %v5163_v9  ;;  %1366 = vmatprep.subr.bf16.mxu0 %v5168_v11 }
  0xb9   :  { %1528 = vmatprep.subr.bf16.mxu1 %v5171_v12 }
  0xbb   :  { %1367 = vmatpush1.bf16.msra.mxu0 %v5166_v13 }
  0xbc   :  { %1529 = vmatpush1.bf16.msra.mxu1 %v5169_v14  ;;  %1368 = vmatprep.subr.bf16.mxu0 %v5174_v15 }
  0xbd   :  { %1530 = vmatprep.subr.bf16.mxu1 %v5177_v16 }
  0xbf   :  { %1369 = vmatpush1.bf16.msra.mxu0 %v5172_v17 }
  0xc0   :  { %1531 = vmatpush1.bf16.msra.mxu1 %v5175_v19  ;;  %4738 = vmatprep.subr.bf16.mxu0 %v5184_v20 }
  0xc1   :  { %1532 = vmatprep.subr.bf16.mxu1 %v5180_v21 }
  0xc2   :  { %1371 = vmatmul.mubr.bf16.vlgmr.msra.gmra.mrb[0].mxu0 %v51_v23 }
  0xc3   :  { %4739 = vmatpush3.bf16.msra.mxu0 %v5185_v22 }
  0xc4   :  { %1533 = vmatpush1.bf16.msra.mxu1 %v5178_v24  ;;  %4740 = vmatprep.subr.bf16.mxu0 %v5186_v25 }
  0xc5   :  { %1543 = vmatprep.subr.bf16.mxu1 %v5183_v26 }
  0xc7   :  { %1535 = vmatmul.mubr.bf16.vlgmr.msra.gmra.mrb[4].mxu1 %v51_v23  ;;  %4741 = vmatpush3.bf16.msra.mxu0 %v5187_v27 }
  0xc8   :  { %1544 = vmatpush1.bf16.msra.mxu1 %v5181_v28  ;;  %1575 = vmatprep.mubr.bf16.mxu1 %v5662_v2 }
  0xc9   :  { %4742 = vmatprep.subr.bf16.mxu0 %v5188_v29 }
  0xcb   :  { %4743 = vmatpush3.bf16.msra.mxu0 %v5189_v30 }
  0xcc   :  { %4744 = vmatprep.subr.bf16.mxu0 %v5190_v31 }
  0xcf   :  { %4745 = vmatpush3.bf16.msra.mxu0 %v5191_v32 }
  0xd0   :  { %4746 = vmatprep.subr.bf16.mxu0 %v5192_v33 }
  0xd3   :  { %4428 = vmatmul.mubr.msk.bf16.vlgmr.msra.gmra.mrb[4].mxu1 %vm1252_vm0, %v5757_v10  ;;  %4747 = vmatpush3.bf16.msra.mxu0 %v5193_v34 }
  0xd4   :  { %4748 = vmatprep.subr.bf16.mxu0 %v5194_v35  ;;  %2298 = vmatprep.mubr.bf16.mxu1 %v5662_v2 }
  0xd7   :  { %4749 = vmatpush3.bf16.msra.mxu0 %v5195_v36 }
  0xda   :  { %v1413_v37 = vpop.f32.mrb[0].mxu1 }
  0xdb   :  { %v1415_v38 = vpop.f32.mrb[1].mxu1 }
  0xdc   :  { %v1417_v39 = vpop.f32.mrb[2].mxu1 }
  0xdd   :  { %v1418_v40 = vpop.f32.mrb[3].mxu1 }
  0xde   :  { %18 = vsyncpa [#allocation5], 0  ;;  %v5196_v41 = vld [vmem:[%s7339_s3 + $0x70] sm:$0xff]   ;;  %v5198_v10 = vld [vmem:[%s7339_s3 + $0x78] sm:$0xff]   ;;  %v252_v45 = vlaneseq  ;;  %v5663_v35 = vmov 0.0|0.0   ;;  %vm5665_vm4 = vmmov 0  }
  0xdf   :  { %v5197_v42 = vld [vmem:[%s7339_s3 + $0x30] sm:$0xff]   ;;  %4750 = vmatprep.subr.bf16.mxu0 %v5196_v41  ;;  %v5199_v43 = vld [vmem:[%s7339_s3 + $0x38] sm:$0xff]   ;;  %v5200_v44 = vld [vmem:[%s7339_s3 + $0xc0] sm:$0xff]   ;;  %v5664_v36 = vmov 1.0|1.0  }
  0xe0   :  { %4751 = vmatpush3.bf16.msra.mxu0 %v5197_v42  ;;  %v6398_v46 = vshrl.u32 %v252_v45, 7  ;;  %v250_v48 = vld [vmem:[%s7338_s2] sm:$0xf]  ;;  %v5202_v1 = vld [vmem:[%s7339_s3 + $0xc8] sm:$0xff]   ;;  %v5204_v5 = vld [vmem:[%s7339_s3 + $0xd0] sm:$0xff]   ;;  %v6462_v29 = vand.u32 127, %v252_v45 }
  0xe1   :  { %4752 = vmatprep.subr.bf16.mxu0 %v5198_v10  ;;  %v5201_v63 = vld [vmem:[%s7339_s3 + $0x80] sm:$0xff]   ;;  %v5203_v4 = vld [vmem:[%s7339_s3 + $0x88] sm:$0xff]   ;;  %v5205_v7 = vld [vmem:[%s7339_s3 + $0x90] sm:$0xff]  }
  0xe2   :  { %v6401_v47 = vsub.s32 0, %v6398_v46  ;;  %v6407_v49 = vsub.s32 1, %v6398_v46  ;;  %v6418_v3 = vsub.s32 3, %v6398_v46  ;;  %v5206_v9 = vld [vmem:[%s7339_s3 + $0xd8] sm:$0xff]   ;;  %v5208_v17 = vld [vmem:[%s7339_s3 + $0xe0] sm:$0xff]   ;;  %v6443_v20 = vsub.s32 2, %v6398_v46 }
  0xe3   :  { %v5207_v15 = vld [vmem:[%s7339_s3 + $0x98] sm:$0xff]   ;;  %v5209_v19 = vld [vmem:[%s7339_s3 + $0xa0] sm:$0xff]   ;;  %v5210_v21 = vld [vmem:[%s7339_s3 + $0xe8] sm:$0xff]   ;;  %v1945_v25 = vadd.s32 8, %v6398_v46  ;;  %v1946_v30 = vadd.s32 64, %v6398_v46  ;;  %vm1937_vm5 = vcmp.lt.s32.totalorder %v6462_v29, 64 }
  0xe4   :  { %4753 = vmatpush3.bf16.msra.mxu0 %v5199_v43  ;;  %v255_v50 = vrot.slane %v250_v48, %v6401_v47  ;;  %v259_v51 = vrot.slane %v250_v48, %v6407_v49  ;;  %v267_v6 = vrot.slane %v250_v48, %v6418_v3  ;;  %v5211_v22 = vld [vmem:[%s7339_s3 + $0xa8] sm:$0xff]   ;;  %v263_v23 = vrot.slane %v250_v48, %v6443_v20  ;;  %v5212_v24 = vld [vmem:[%s7339_s3 + $0xf0] sm:$0xff]   ;;  %v5214_v28 = vld [vmem:[%s7339_s3 + $0xf8] sm:$0xff]  }
  0xe5   :  { %4760 = vmatprep.subr.bf16.mxu0 %v5200_v44  ;;  %v5213_v26 = vld [vmem:[%s7339_s3 + $0xb0] sm:$0xff]   ;;  %v1947_v31 = vadd.s32 64, %v1945_v25  ;;  %v5215_v32 = vld [vmem:[%s7339_s3 + $0xb8] sm:$0xff]   ;;  %vm1948_vm1 = vcmp.eq.s32.totalorder %v6462_v29, %v1946_v30 }
  0xe6   :  { %v5216_v39 = vld [vmem:[%s7341_s5] ss:$16 sps:$4 sm:$0xff]   ;;  %v5218_v40 = vld [vmem:[%s7341_s5 + $0x4] ss:$16 sps:$4 sm:$0xff]   ;;  %v5219_v41 = vld [vmem:[%s7341_s5 + $0x8] ss:$16 sps:$4 sm:$0xff]  }
  0xe7   :  { %vm1949_vm2 = vcmp.eq.s32.totalorder %v6462_v29, %v1947_v31  ;;  %v5221_v42 = vld [vmem:[%s7341_s5 + $0xc] ss:$16 sps:$4 sm:$0xff]   ;;  %2266 = vmatprep.subr.bf16.mxu1 %v5218_v40  ;;  %v5222_v43 = vld [vmem:[%s7341_s5 + $0x20] ss:$16 sps:$4 sm:$0xff]   ;;  %v5225_v44 = vld [vmem:[%s7341_s5 + $0x28] ss:$16 sps:$4 sm:$0xff]  }
  0xe8   :  { %vm4837_vm3 = vmpackc.low %vm1949_vm2, %vm1948_vm1  ;;  %2267 = vmatpush1.bf16.msra.mxu1 %v5216_v39  ;;  %v5227_v10 = vld [vmem:[%s7341_s5 + $0x2c] ss:$16 sps:$4 sm:$0xff]   ;;  %v5230_v45 = vld [vmem:[%s7341_s5 + $0x44] ss:$16 sps:$4 sm:$0xff]  }
  0xe9   :  { %v5233_v48 = vld [vmem:[%s7341_s5 + $0x4c] ss:$16 sps:$4 sm:$0xff]   ;;  %v5278_v29 = vld [vmem:[%s7343_s7 + $0x74] ss:$28 sps:$4 sm:$0xff]  }
 0x195   :  { %v1372_v52 = vpop.f32.mrb[0].mxu0 }
 0x196   :  { %v4839_v53 = vadd.f32 %v1372_v52, %v255_v50  ;;  %v1374_v54 = vpop.f32.mrb[1].mxu0  ;;  %v5228_v50 = vld [vmem:[%s7341_s5 + $0x40] ss:$16 sps:$4 sm:$0xff]   ;;  %v5236_v52 = vld [vmem:[%s7341_s5 + $0x64] ss:$16 sps:$4 sm:$0xff]  }
 0x197   :  { %v4841_v55 = vadd.f32 %v1374_v54, %v259_v51  ;;  %v1376_v56 = vpop.f32.mrb[2].mxu0  ;;  %v5231_v51 = vld [vmem:[%s7341_s5 + $0x48] ss:$16 sps:$4 sm:$0xff]   ;;  %v5234_v54 = vld [vmem:[%s7341_s5 + $0x60] ss:$16 sps:$4 sm:$0xff]  }
 0x198   :  { %v4840_v57 = vadd.f32 %v4839_v53, %v1413_v37  ;;  %v1377_v58 = vpop.f32.mrb[3].mxu0  ;;  %v5666_v37 = vmov 0.0   ;;  %v5239_v53 = vld [vmem:[%s7341_s5 + $0x6c] ss:$16 sps:$4 sm:$0xff]   ;;  %v5242_v56 = vld [vmem:[%s7341_s5 + $0x84] ss:$16 sps:$4 sm:$0xff]  }
 0x199   :  { %v4842_v59 = vadd.f32 %v4841_v55, %v1415_v38  ;;  %v1954_v38 = vld [vmem:[%s7345_s9] sm:$0xff]  ;;  %v5237_v55 = vld [vmem:[%s7341_s5 + $0x68] ss:$16 sps:$4 sm:$0xff]  }
 0x19a   :  { %v1584_v60 = vmax.f32 %v4840_v57, 0.0  ;;  %v5245_v57 = vld [vmem:[%s7341_s5 + $0x8c] ss:$16 sps:$4 sm:$0xff]   ;;  %v5240_v58 = vld [vmem:[%s7341_s5 + $0x80] ss:$16 sps:$4 sm:$0xff]  }
 0x19b   :  { %v1585_v61 = vmax.f32 %v4842_v59, 0.0  ;;  %v5243_v59 = vld [vmem:[%s7341_s5 + $0x88] ss:$16 sps:$4 sm:$0xff]  }
 0x19c   :  { %v1588_v0 = vpack.c.bf16 %v1584_v60, %v1584_v60  ;;  %v5248_v60 = vld [vmem:[%s7341_s5 + $0xa4] ss:$16 sps:$4 sm:$0xff]  }
 0x19d   :  { %v1589_v62 = vpack.c.bf16 %v1585_v61, %v1585_v61  ;;  %v5251_v61 = vld [vmem:[%s7341_s5 + $0xac] ss:$16 sps:$4 sm:$0xff]  }
 0x19f   :  { %1887 = vmatprep.mubr.bf16.mxu0 %v1589_v62  ;;  %v5246_v62 = vld [vmem:[%s7341_s5 + $0xa0] ss:$16 sps:$4 sm:$0xff]  }
 0x1a0   :  { %1888 = vmatmul.mubr.bf16.vlgmr.msra.gmra.mrb[4].mxu0 %v1588_v0  ;;  %v5254_v0 = vld [vmem:[%s7341_s5 + $0xc4] ss:$16 sps:$4 sm:$0xff]  }
 0x1a1   :  { %4761 = vmatpush3.bf16.msra.mxu0 %v5201_v63  ;;  %v5249_v63 = vld [vmem:[%s7341_s5 + $0xa8] ss:$16 sps:$4 sm:$0xff]  }
 0x1a2   :  { %4762 = vmatprep.subr.bf16.mxu0 %v5202_v1  ;;  %v5257_v1 = vld [vmem:[%s7341_s5 + $0xcc] ss:$16 sps:$4 sm:$0xff]  }
 0x1a5   :  { %4763 = vmatpush3.bf16.msra.mxu0 %v5203_v4  ;;  %v5252_v4 = vld [vmem:[%s7341_s5 + $0xc0] ss:$16 sps:$4 sm:$0xff]  }
 0x1a6   :  { %v1577_v8 = vpop.f32.mrb[4].mxu1  ;;  %4764 = vmatprep.subr.bf16.mxu0 %v5204_v5  ;;  %v5255_v5 = vld [vmem:[%s7341_s5 + $0xc8] ss:$16 sps:$4 sm:$0xff]  }
 0x1a7   :  { %v1579_v11 = vpop.f32.mrb[5].mxu1  ;;  %v4843_v27 = vadd.f32 %v1577_v8, %v263_v23  ;;  %v5258_v8 = vld [vmem:[%s7341_s5 + $0xe0] ss:$16 sps:$4 sm:$0xff]  }
 0x1a8   :  { %v4844_v12 = vadd.f32 %v1579_v11, %v267_v6  ;;  %v1581_v13 = vpop.f32.mrb[6].mxu1  ;;  %v5260_v6 = vld [vmem:[%s7341_s5 + $0xe4] ss:$16 sps:$4 sm:$0xff]  }
 0x1a9   :  { %v1582_v14 = vpop.f32.mrb[7].mxu1  ;;  %4765 = vmatpush3.bf16.msra.mxu0 %v5205_v7  ;;  %v1586_v33 = vmax.f32 %v4843_v27, 0.0  ;;  %v5263_v7 = vld [vmem:[%s7341_s5 + $0xec] ss:$16 sps:$4 sm:$0xff]   ;;  %v5266_v11 = vld [vmem:[%s7343_s7 + $0x4] ss:$28 sps:$4 sm:$0xff]  }
 0x1aa   :  { %v1587_v16 = vmax.f32 %v4844_v12, 0.0  ;;  %4766 = vmatprep.subr.bf16.mxu0 %v5206_v9  ;;  %v5261_v9 = vld [vmem:[%s7341_s5 + $0xe8] ss:$16 sps:$4 sm:$0xff]  }
 0x1ab   :  { %v1590_v34 = vpack.c.bf16 %v1586_v33, %v1586_v33  ;;  %v5269_v12 = vld [vmem:[%s7343_s7 + $0xc] ss:$28 sps:$4 sm:$0xff]  }
 0x1ac   :  { %v1591_v18 = vpack.c.bf16 %v1587_v16, %v1587_v16 }
 0x1ad   :  { %4767 = vmatpush3.bf16.msra.mxu0 %v5207_v15 }
 0x1ae   :  { %1927 = vmatprep.mubr.bf16.mxu0 %v1591_v18  ;;  %4768 = vmatprep.subr.bf16.mxu0 %v5208_v17  ;;  %v4429_v18 = vld [vmem:[%s7340_s4] ss:$0 sm:$0xff] }
 0x1b1   :  { %4769 = vmatpush3.bf16.msra.mxu0 %v5209_v19 }
 0x1b2   :  { %4770 = vmatprep.subr.bf16.mxu0 %v5210_v21 }
 0x1b5   :  { %4771 = vmatpush3.bf16.msra.mxu0 %v5211_v22 }
 0x1b6   :  { %4772 = vmatprep.subr.bf16.mxu0 %v5212_v24 }
 0x1b9   :  { %4773 = vmatpush3.bf16.msra.mxu0 %v5213_v26 }
 0x1ba   :  { %4774 = vmatprep.subr.bf16.mxu0 %v5214_v28 }
 0x1bd   :  { %4775 = vmatpush3.bf16.msra.mxu0 %v5215_v32 }
 0x1be   :  { %4836 = vmatprep.subr.bf16.mxu0 %v5663_v35 }
 0x1c0   :  { %1928 = vmatmul.mubr.bf16.vlgmr.msra.gmra.mrb[8].mxu0 %v1590_v34 }
 0x1c1   :  { %4838 = vmatpush3.bf16.msk.msra.mxu0 %vm4837_vm3, %v5664_v36  ;;  %4833 = vmatprep.mubr.msk.f32.mxu0 %vm5665_vm4, %v5666_v37 }
 0x1c2   :  { %2307 = vmatprep.subr.bf16.mxu0 %v5221_v42  ;;  %v5264_v42 = vld [vmem:[%s7343_s7] ss:$28 sps:$4 sm:$0xff]  }
 0x1c8   :  { %4834 = vmatmul.mubr.msk.f32.vlgmr.msra.gmra.mrb[12].mxu0 %vm1252_vm0, %v1954_v38 }
 0x1c9   :  { %2339 = vmatprep.mubr.bf16.mxu0 %v5662_v2  ;;  %2308 = vmatpush1.bf16.msra.mxu0 %v5219_v41  ;;  %v5224_v2 = vld [vmem:[%s7341_s5 + $0x24] ss:$16 sps:$4 sm:$0xff]  }
 0x1ca   :  { %2268 = vmatprep.subr.bf16.mxu1 %v5224_v2  ;;  %2309 = vmatprep.subr.bf16.mxu0 %v5227_v10  ;;  %v5267_v2 = vld [vmem:[%s7343_s7 + $0x8] ss:$28 sps:$4 sm:$0xff]  }
 0x1cb   :  { %2269 = vmatpush1.bf16.msra.mxu1 %v5222_v43  ;;  %v5272_v43 = vld [vmem:[%s7343_s7 + $0x3c] ss:$28 sps:$4 sm:$0xff]  }
 0x1cc   :  { %2270 = vmatprep.subr.bf16.mxu1 %v5230_v45 }
 0x1cd   :  { %2310 = vmatpush1.bf16.msra.mxu0 %v5225_v44  ;;  %v5275_v44 = vld [vmem:[%s7343_s7 + $0x44] ss:$28 sps:$4 sm:$0xff]  }
 0x1ce   :  { %2311 = vmatprep.subr.bf16.mxu0 %v5233_v48 }
 0x1cf   :  { %2271 = vmatpush1.bf16.msra.mxu1 %v5228_v50  ;;  %v5270_v50 = vld [vmem:[%s7343_s7 + $0x38] ss:$28 sps:$4 sm:$0xff]  }
 0x1d0   :  { %2272 = vmatprep.subr.bf16.mxu1 %v5236_v52 }
 0x1d1   :  { %2312 = vmatpush1.bf16.msra.mxu0 %v5231_v51  ;;  %v5273_v51 = vld [vmem:[%s7343_s7 + $0x40] ss:$28 sps:$4 sm:$0xff]  }
 0x1d2   :  { %2313 = vmatprep.subr.bf16.mxu0 %v5239_v53  ;;  %v5281_v53 = vld [vmem:[%s7343_s7 + $0x7c] ss:$28 sps:$4 sm:$0xff]  }
 0x1d3   :  { %2273 = vmatpush1.bf16.msra.mxu1 %v5234_v54 }
 0x1d4   :  { %2274 = vmatprep.subr.bf16.mxu1 %v5242_v56  ;;  %v5279_v56 = vld [vmem:[%s7343_s7 + $0x78] ss:$28 sps:$4 sm:$0xff]  }
 0x1d5   :  { %2314 = vmatpush1.bf16.msra.mxu0 %v5237_v55  ;;  %v5276_v55 = vld [vmem:[%s7343_s7 + $0x70] ss:$28 sps:$4 sm:$0xff]  }
 0x1d6   :  { %2315 = vmatprep.subr.bf16.mxu0 %v5245_v57 }
 0x1d7   :  { %2275 = vmatpush1.bf16.msra.mxu1 %v5240_v58  ;;  %v5284_v58 = vld [vmem:[%s7343_s7 + $0xac] ss:$28 sps:$4 sm:$0xff]  }
 0x1d8   :  { %2276 = vmatprep.subr.bf16.mxu1 %v5248_v60 }
 0x1d9   :  { %2316 = vmatpush1.bf16.msra.mxu0 %v5243_v59  ;;  %v5287_v59 = vld [vmem:[%s7343_s7 + $0xb4] ss:$28 sps:$4 sm:$0xff]  }
 0x1da   :  { %2317 = vmatprep.subr.bf16.mxu0 %v5251_v61  ;;  %v5282_v61 = vld [vmem:[%s7343_s7 + $0xa8] ss:$28 sps:$4 sm:$0xff]  }
 0x1db   :  { %2277 = vmatpush1.bf16.msra.mxu1 %v5246_v62  ;;  %v5285_v62 = vld [vmem:[%s7343_s7 + $0xb0] ss:$28 sps:$4 sm:$0xff]  }
 0x1dc   :  { %2278 = vmatprep.subr.bf16.mxu1 %v5254_v0  ;;  %v5290_v0 = vld [vmem:[%s7343_s7 + $0xe4] ss:$28 sps:$4 sm:$0xff]  }
 0x1dd   :  { %2318 = vmatpush1.bf16.msra.mxu0 %v5249_v63 }
 0x1de   :  { %2319 = vmatprep.subr.bf16.mxu0 %v5257_v1  ;;  %v5293_v1 = vld [vmem:[%s7343_s7 + $0xec] ss:$28 sps:$4 sm:$0xff]  }
 0x1df   :  { %2279 = vmatpush1.bf16.msra.mxu1 %v5252_v4 }
 0x1e0   :  { %2280 = vmatprep.subr.bf16.mxu1 %v5260_v6  ;;  %v5291_v6 = vld [vmem:[%s7343_s7 + $0xe8] ss:$28 sps:$4 sm:$0xff]  }
 0x1e1   :  { %2320 = vmatpush1.bf16.msra.mxu0 %v5255_v5  ;;  %v5288_v5 = vld [vmem:[%s7343_s7 + $0xe0] ss:$28 sps:$4 sm:$0xff]  }
 0x1e2   :  { %2321 = vmatprep.subr.bf16.mxu0 %v5263_v7  ;;  %v5296_v7 = vld [vmem:[%s7343_s7 + $0x11c] ss:$28 sps:$4 sm:$0xff]  }
 0x1e3   :  { %2281 = vmatpush1.bf16.msra.mxu1 %v5258_v8  ;;  %v5299_v8 = vld [vmem:[%s7343_s7 + $0x124] ss:$28 sps:$4 sm:$0xff]  }
 0x1e4   :  { %3801 = vmatprep.subr.bf16.mxu1 %v5266_v11  ;;  %v5297_v11 = vld [vmem:[%s7343_s7 + $0x120] ss:$28 sps:$4 sm:$0xff]  }
 0x1e5   :  { %2322 = vmatpush1.bf16.msra.mxu0 %v5261_v9  ;;  %v5294_v9 = vld [vmem:[%s7343_s7 + $0x118] ss:$28 sps:$4 sm:$0xff]  }
 0x1e6   :  { %3883 = vmatprep.subr.bf16.mxu0 %v5269_v12  ;;  %v5302_v12 = vld [vmem:[%s7343_s7 + $0x154] ss:$28 sps:$4 sm:$0xff]  }
 0x273   :  { %v4754_v13 = vpop.f32.mrb[4].mxu0 }
 0x274   :  { %v4755_v14 = vpop.f32.mrb[5].mxu0 }
 0x275   :  { %v4756_v15 = vadd.f32 %v4755_v14, %v4754_v13  ;;  %v4757_v16 = vpop.f32.mrb[6].mxu0  ;;  %v5305_v13 = vld [vmem:[%s7343_s7 + $0x15c] ss:$28 sps:$4 sm:$0xff]   ;;  %v5300_v14 = vld [vmem:[%s7343_s7 + $0x150] ss:$28 sps:$4 sm:$0xff]  }
 0x276   :  { %v4758_v17 = vpop.f32.mrb[7].mxu0  ;;  %v5308_v16 = vld [vmem:[%s7343_s7 + $0x18c] ss:$28 sps:$4 sm:$0xff]  }
 0x277   :  { %v1890_v22 = vadd.f32 %v4756_v15, %v4429_v18  ;;  %v5303_v15 = vld [vmem:[%s7343_s7 + $0x158] ss:$28 sps:$4 sm:$0xff]   ;;  %v5306_v18 = vld [vmem:[%s7343_s7 + $0x188] ss:$28 sps:$4 sm:$0xff]  }
 0x278   :  { %v5311_v17 = vld [vmem:[%s7343_s7 + $0x194] ss:$28 sps:$4 sm:$0xff]  }
 0x293   :  { %v4776_v19 = vpop.f32.mrb[8].mxu0 }
 0x294   :  { %v4777_v21 = vpop.f32.mrb[9].mxu0 }
 0x295   :  { %v4778_v23 = vadd.f32 %v4777_v21, %v4776_v19  ;;  %v4779_v24 = vpop.f32.mrb[10].mxu0  ;;  %v5309_v19 = vld [vmem:[%s7343_s7 + $0x190] ss:$28 sps:$4 sm:$0xff]   ;;  %v5314_v21 = vld [vmem:[%s7343_s7 + $0x1c4] ss:$28 sps:$4 sm:$0xff]  }
 0x296   :  { %v4780_v25 = vpop.f32.mrb[11].mxu0  ;;  %v5315_v24 = vld [vmem:[%s7343_s7 + $0x1c8] ss:$28 sps:$4 sm:$0xff]  }
 0x297   :  { %v1930_v26 = vadd.f32 %v4778_v23, %v1890_v22  ;;  %v5317_v22 = vld [vmem:[%s7343_s7 + $0x1cc] ss:$28 sps:$4 sm:$0xff]   ;;  %v5312_v23 = vld [vmem:[%s7343_s7 + $0x1c0] ss:$28 sps:$4 sm:$0xff]  }
 0x298   :  { %v5320_v25 = vld [vmem:[%s7343_s7 + $0x1fc] ss:$28 sps:$4 sm:$0xff]  }
 0x299   :  { %v1939_v27 = vsel %vm1937_vm5, 0.0, %v1930_v26  ;;  %v1938_v33 = vsel %vm1937_vm5, %v1930_v26, 0.0  ;;  %v5323_v26 = vld [vmem:[%s7343_s7 + $0x204] ss:$28 sps:$4 sm:$0xff]  }
 0x29a   :  { %v1940_v28 = vmul.f32 0.5, %v1939_v27  ;;  %v2034_v34 = vmul.f32 %v1938_v33, %v1938_v33  ;;  %v2036_v36 = vadd.f32 1.0, %v1939_v27  ;;  %v5318_v27 = vld [vmem:[%s7343_s7 + $0x1f8] ss:$28 sps:$4 sm:$0xff]  }
 0x29b   :  { %v2024_v30 = vpop.f32.mrb[12].mxu0 }
 0x29c   :  { %v1941_v31 = vmul.f32 1.442695, %v1940_v28  ;;  %v4835_v32 = vpop.f32.mrb[13].mxu0  ;;  %v2035_v41 = vsub.f32 0.0, %v2034_v34  ;;  %v5321_v28 = vld [vmem:[%s7343_s7 + $0x200] ss:$28 sps:$4 sm:$0xff]  }
 0x29d   :  { %v5324_v32 = vld [vmem:[%s7343_s7 + $0x230] ss:$28 sps:$4 sm:$0xff]  }
 0x29e   :  { %5584 = vpow2.f32 %v1941_v31  ;;  %v5329_v31 = vld [vmem:[%s7343_s7 + $0x23c] ss:$28 sps:$4 sm:$0xff]   ;;  %v5332_v34 = vld [vmem:[%s7343_s7 + $0x26c] ss:$28 sps:$4 sm:$0xff]  }
 0x2a8   :  { %v5585_v35 = vpop.eup %5584 }
 0x2a9   :  { %v2037_v37 = vmul.f32 %v5585_v35, %v5585_v35  ;;  %v2028_v38 = vmul.f32 %v5585_v35, %v2024_v30  ;;  %v5326_v30 = vld [vmem:[%s7343_s7 + $0x234] ss:$28 sps:$4 sm:$0xff]  }
 0x2aa   :  { %v5335_v35 = vld [vmem:[%s7343_s7 + $0x274] ss:$28 sps:$4 sm:$0xff]  }
 0x2ab   :  { %v2038_v39 = vsub.f32 %v2036_v36, %v2037_v37  ;;  %v2029_v40 = vadd.f32 %v2028_v38, %v1938_v33  ;;  %v5327_v33 = vld [vmem:[%s7343_s7 + $0x238] ss:$28 sps:$4 sm:$0xff]   ;;  %v5330_v36 = vld [vmem:[%s7343_s7 + $0x268] ss:$28 sps:$4 sm:$0xff]   ;;  %v5333_v37 = vld [vmem:[%s7343_s7 + $0x270] ss:$28 sps:$4 sm:$0xff]  }
 0x2ac   :  { %v5338_v38 = vld [vmem:[%s7343_s7 + $0x2a4] ss:$28 sps:$4 sm:$0xff]  }
 0x2ad   :  { %v2051_v10 = vpack.c.bf16 %v2029_v40, %v2029_v40  ;;  %v2039_v45 = vsel %vm1937_vm5, %v2035_v41, %v2038_v39  ;;  %v5341_v39 = vld [vmem:[%s7343_s7 + $0x2ac] ss:$28 sps:$4 sm:$0xff]   ;;  %v5336_v40 = vld [vmem:[%s7343_s7 + $0x2a0] ss:$28 sps:$4 sm:$0xff]  }
 0x2ae   :  { %v2043_v48 = vrot.slane %v2039_v45, 4  ;;  %v5339_v41 = vld [vmem:[%s7343_s7 + $0x2a8] ss:$28 sps:$4 sm:$0xff]  }
 0x2af   :  { %2299 = vmatmul.mubr.bf16.vlgmr.msra.gmra.mrb[8].mxu1 %v2051_v10  ;;  %2340 = vmatmul.mubr.bf16.vlgmr.msra.gmra.mrb[16].mxu0 %v2051_v10  ;;  %v5342_v10 = vld [vmem:[%s7343_s7 + $0x2d8] ss:$28 sps:$4 sm:$0xff]  }
 0x2b0   :  { %3802 = vmatpush1.bf16.msra.mxu1 %v5264_v42  ;;  %3884 = vmatpush1.bf16.msra.mxu0 %v5267_v2  ;;  %v2044_v52 = vadd.f32 %v2043_v48, %v2039_v45  ;;  %v5344_v42 = vld [vmem:[%s7343_s7 + $0x2dc] ss:$28 sps:$4 sm:$0xff]   ;;  %v5347_v2 = vld [vmem:[%s7343_s7 + $0x2e4] ss:$28 sps:$4 sm:$0xff]   ;;  %v5348_v48 = vld [vmem:[%s7343_s7 + $0x310] ss:$28 sps:$4 sm:$0xff]  }
 0x2b1   :  { %3803 = vmatprep.subr.bf16.mxu1 %v5272_v43  ;;  %3885 = vmatprep.subr.bf16.mxu0 %v5275_v44  ;;  %v5345_v43 = vld [vmem:[%s7343_s7 + $0x2e0] ss:$28 sps:$4 sm:$0xff]   ;;  %v5350_v44 = vld [vmem:[%s7343_s7 + $0x314] ss:$28 sps:$4 sm:$0xff]  }
 0x2b2   :  { %v2045_v54 = vrot.slane %v2044_v52, 2  ;;  %v5353_v45 = vld [vmem:[%s7343_s7 + $0x31c] ss:$28 sps:$4 sm:$0xff]  }
 0x2b4   :  { %3804 = vmatpush1.bf16.msra.mxu1 %v5270_v50  ;;  %3886 = vmatpush1.bf16.msra.mxu0 %v5273_v51  ;;  %v2046_v57 = vadd.f32 %v2045_v54, %v2044_v52  ;;  %v5351_v50 = vld [vmem:[%s7343_s7 + $0x318] ss:$28 sps:$4 sm:$0xff]   ;;  %v5356_v51 = vld [vmem:[%s7343_s7 + $0x34c] ss:$28 sps:$4 sm:$0xff]   ;;  %v5362_v54 = vld [vmem:[%s7343_s7 + $0x384] ss:$28 sps:$4 sm:$0xff]  }
 0x2b5   :  { %3805 = vmatprep.subr.bf16.mxu1 %v5278_v29  ;;  %3887 = vmatprep.subr.bf16.mxu0 %v5281_v53  ;;  %v5359_v52 = vld [vmem:[%s7343_s7 + $0x354] ss:$28 sps:$4 sm:$0xff]   ;;  %v5354_v29 = vld [vmem:[%s7343_s7 + $0x348] ss:$28 sps:$4 sm:$0xff]  }
 0x2b6   :  { %v2047_v60 = vrot.slane %v2046_v57, 1  ;;  %v5357_v53 = vld [vmem:[%s7343_s7 + $0x350] ss:$28 sps:$4 sm:$0xff]  }
 0x2b8   :  { %3806 = vmatpush1.bf16.msra.mxu1 %v5276_v55  ;;  %3888 = vmatpush1.bf16.msra.mxu0 %v5279_v56  ;;  %v2048_v63 = vadd.f32 %v2047_v60, %v2046_v57  ;;  %v5365_v55 = vld [vmem:[%s7343_s7 + $0x38c] ss:$28 sps:$4 sm:$0xff]   ;;  %v6782_v56 = vld [vmem:[%s7342_s6] sm:$0xf] }
 0x2b9   :  { %3807 = vmatprep.subr.bf16.mxu1 %v5284_v58  ;;  %3889 = vmatprep.subr.bf16.mxu0 %v5287_v59  ;;  %v2089_v57 = vrot.slane %v6782_v56, %v6401_v47  ;;  %v2093_v58 = vrot.slane %v6782_v56, %v6407_v49  ;;  %v2101_v59 = vrot.slane %v6782_v56, %v6418_v3 }
 0x2ba   :  { %v2049_v4 = vmul.f32 -0.5, %v2048_v63 }
 0x2bc   :  { %3808 = vmatpush1.bf16.msra.mxu1 %v5282_v61  ;;  %3890 = vmatpush1.bf16.msra.mxu0 %v5285_v62  ;;  %2050 = vst [vmem:[#allocation4] sm:$0x1] %v2049_v4 }
 0x2bd   :  { %3809 = vmatprep.subr.bf16.mxu1 %v5290_v0  ;;  %3891 = vmatprep.subr.bf16.mxu0 %v5293_v1 }
 0x2c0   :  { %3810 = vmatpush1.bf16.msra.mxu1 %v5288_v5  ;;  %3892 = vmatpush1.bf16.msra.mxu0 %v5291_v6 }
 0x2c1   :  { %3811 = vmatprep.subr.bf16.mxu1 %v5296_v7  ;;  %3893 = vmatprep.subr.bf16.mxu0 %v5299_v8 }
 0x2c4   :  { %3812 = vmatpush1.bf16.msra.mxu1 %v5294_v9  ;;  %3894 = vmatpush1.bf16.msra.mxu0 %v5297_v11 }
 0x2c5   :  { %3813 = vmatprep.subr.bf16.mxu1 %v5302_v12  ;;  %3895 = vmatprep.subr.bf16.mxu0 %v5305_v13 }
 0x2c8   :  { %3814 = vmatpush1.bf16.msra.mxu1 %v5300_v14  ;;  %3896 = vmatpush1.bf16.msra.mxu0 %v5303_v15  ;;  %v5360_v14 = vld [vmem:[%s7343_s7 + $0x380] ss:$28 sps:$4 sm:$0xff]   ;;  %v5363_v15 = vld [vmem:[%s7343_s7 + $0x388] ss:$28 sps:$4 sm:$0xff]  }
 0x2c9   :  { %3815 = vmatprep.subr.bf16.mxu1 %v5308_v16  ;;  %3897 = vmatprep.subr.bf16.mxu0 %v5311_v17  ;;  %v5368_v17 = vld [vmem:[%s7343_s7 + $0x3bc] ss:$28 sps:$4 sm:$0xff]  }
 0x2cc   :  { %3816 = vmatpush1.bf16.msra.mxu1 %v5306_v18  ;;  %3898 = vmatpush1.bf16.msra.mxu0 %v5309_v19  ;;  %v5371_v18 = vld [vmem:[%s7343_s7 + $0x3c4] ss:$28 sps:$4 sm:$0xff]  }
 0x2cd   :  { %3817 = vmatprep.subr.bf16.mxu1 %v5314_v21  ;;  %3899 = vmatprep.subr.bf16.mxu0 %v5317_v22  ;;  %v5366_v21 = vld [vmem:[%s7343_s7 + $0x3b8] ss:$28 sps:$4 sm:$0xff]   ;;  %v5369_v22 = vld [vmem:[%s7343_s7 + $0x3c0] ss:$28 sps:$4 sm:$0xff]  }
 0x2d0   :  { %3818 = vmatpush1.bf16.msra.mxu1 %v5312_v23  ;;  %3900 = vmatpush1.bf16.msra.mxu0 %v5315_v24  ;;  %v5374_v23 = vld [vmem:[%s7343_s7 + $0x3f4] ss:$28 sps:$4 sm:$0xff]   ;;  %v5377_v24 = vld [vmem:[%s7343_s7 + $0x3fc] ss:$28 sps:$4 sm:$0xff]  }
 0x2d1   :  { %3819 = vmatprep.subr.bf16.mxu1 %v5320_v25  ;;  %3901 = vmatprep.subr.bf16.mxu0 %v5323_v26  ;;  %v5372_v25 = vld [vmem:[%s7343_s7 + $0x3f0] ss:$28 sps:$4 sm:$0xff]   ;;  %v5375_v26 = vld [vmem:[%s7343_s7 + $0x3f8] ss:$28 sps:$4 sm:$0xff]  }
 0x2d4   :  { %3820 = vmatpush1.bf16.msra.mxu1 %v5318_v27  ;;  %3902 = vmatpush1.bf16.msra.mxu0 %v5321_v28  ;;  %v5380_v27 = vld [vmem:[%s7343_s7 + $0x42c] ss:$28 sps:$4 sm:$0xff]   ;;  %v5383_v28 = vld [vmem:[%s7343_s7 + $0x434] ss:$28 sps:$4 sm:$0xff]  }
 0x2d5   :  { %3821 = vmatprep.subr.bf16.mxu1 %v5326_v30  ;;  %3903 = vmatprep.subr.bf16.mxu0 %v5329_v31  ;;  %v5378_v30 = vld [vmem:[%s7343_s7 + $0x428] ss:$28 sps:$4 sm:$0xff]   ;;  %v5381_v31 = vld [vmem:[%s7343_s7 + $0x430] ss:$28 sps:$4 sm:$0xff]  }
 0x2d8   :  { %3822 = vmatpush1.bf16.msra.mxu1 %v5324_v32  ;;  %3904 = vmatpush1.bf16.msra.mxu0 %v5327_v33  ;;  %v5386_v32 = vld [vmem:[%s7343_s7 + $0x464] ss:$28 sps:$4 sm:$0xff]   ;;  %v5389_v33 = vld [vmem:[%s7343_s7 + $0x46c] ss:$28 sps:$4 sm:$0xff]  }
 0x2d9   :  { %3823 = vmatprep.subr.bf16.mxu1 %v5332_v34  ;;  %3905 = vmatprep.subr.bf16.mxu0 %v5335_v35  ;;  %v5384_v34 = vld [vmem:[%s7343_s7 + $0x460] ss:$28 sps:$4 sm:$0xff]   ;;  %v5387_v35 = vld [vmem:[%s7343_s7 + $0x468] ss:$28 sps:$4 sm:$0xff]  }
 0x2dc   :  { %3824 = vmatpush1.bf16.msra.mxu1 %v5330_v36  ;;  %3906 = vmatpush1.bf16.msra.mxu0 %v5333_v37  ;;  %v5392_v36 = vld [vmem:[%s7343_s7 + $0x49c] ss:$28 sps:$4 sm:$0xff]   ;;  %v5395_v37 = vld [vmem:[%s7343_s7 + $0x4a4] ss:$28 sps:$4 sm:$0xff]  }
 0x2dd   :  { %3825 = vmatprep.subr.bf16.mxu1 %v5338_v38  ;;  %3907 = vmatprep.subr.bf16.mxu0 %v5341_v39  ;;  %v5390_v38 = vld [vmem:[%s7343_s7 + $0x498] ss:$28 sps:$4 sm:$0xff]   ;;  %v5393_v39 = vld [vmem:[%s7343_s7 + $0x4a0] ss:$28 sps:$4 sm:$0xff]  }
 0x2e0   :  { %3826 = vmatpush1.bf16.msra.mxu1 %v5336_v40  ;;  %3908 = vmatpush1.bf16.msra.mxu0 %v5339_v41  ;;  %v5398_v40 = vld [vmem:[%s7343_s7 + $0x4d4] ss:$28 sps:$4 sm:$0xff]   ;;  %v5401_v41 = vld [vmem:[%s7343_s7 + $0x4dc] ss:$28 sps:$4 sm:$0xff]  }
 0x2e1   :  { %3827 = vmatprep.subr.bf16.mxu1 %v5344_v42  ;;  %3909 = vmatprep.subr.bf16.mxu0 %v5347_v2  ;;  %v5396_v42 = vld [vmem:[%s7343_s7 + $0x4d0] ss:$28 sps:$4 sm:$0xff]   ;;  %v5399_v2 = vld [vmem:[%s7343_s7 + $0x4d8] ss:$28 sps:$4 sm:$0xff]  }
 0x2e4   :  { %3828 = vmatpush1.bf16.msra.mxu1 %v5342_v10  ;;  %3910 = vmatpush1.bf16.msra.mxu0 %v5345_v43  ;;  %v5404_v10 = vld [vmem:[%s7343_s7 + $0x50c] ss:$28 sps:$4 sm:$0xff]   ;;  %v5407_v43 = vld [vmem:[%s7343_s7 + $0x514] ss:$28 sps:$4 sm:$0xff]  }
 0x2e5   :  { %3829 = vmatprep.subr.bf16.mxu1 %v5350_v44  ;;  %3911 = vmatprep.subr.bf16.mxu0 %v5353_v45  ;;  %v5402_v44 = vld [vmem:[%s7343_s7 + $0x508] ss:$28 sps:$4 sm:$0xff]   ;;  %v5405_v45 = vld [vmem:[%s7343_s7 + $0x510] ss:$28 sps:$4 sm:$0xff]  }
 0x2e8   :  { %3830 = vmatpush1.bf16.msra.mxu1 %v5348_v48  ;;  %3912 = vmatpush1.bf16.msra.mxu0 %v5351_v50  ;;  %v5410_v48 = vld [vmem:[%s7343_s7 + $0x544] ss:$28 sps:$4 sm:$0xff]   ;;  %v5413_v50 = vld [vmem:[%s7343_s7 + $0x54c] ss:$28 sps:$4 sm:$0xff]  }
 0x2e9   :  { %3831 = vmatprep.subr.bf16.mxu1 %v5356_v51  ;;  %3913 = vmatprep.subr.bf16.mxu0 %v5359_v52  ;;  %v5408_v51 = vld [vmem:[%s7343_s7 + $0x540] ss:$28 sps:$4 sm:$0xff]   ;;  %v5411_v52 = vld [vmem:[%s7343_s7 + $0x548] ss:$28 sps:$4 sm:$0xff]  }
 0x2ec   :  { %3832 = vmatpush1.bf16.msra.mxu1 %v5354_v29  ;;  %3914 = vmatpush1.bf16.msra.mxu0 %v5357_v53  ;;  %v5416_v29 = vld [vmem:[%s7343_s7 + $0x57c] ss:$28 sps:$4 sm:$0xff]   ;;  %v5419_v53 = vld [vmem:[%s7343_s7 + $0x584] ss:$28 sps:$4 sm:$0xff]  }
 0x2ed   :  { %3842 = vmatprep.subr.bf16.mxu1 %v5362_v54  ;;  %3924 = vmatprep.subr.bf16.mxu0 %v5365_v55  ;;  %v5414_v54 = vld [vmem:[%s7343_s7 + $0x578] ss:$28 sps:$4 sm:$0xff]   ;;  %v5417_v55 = vld [vmem:[%s7343_s7 + $0x580] ss:$28 sps:$4 sm:$0xff]  }
 0x382   :  { %v2300_v60 = vpop.f32.mrb[8].mxu1  ;;  %v6790_v61 = vpop.f32.mrb[16].mxu0 }
 0x383   :  { %v2301_v62 = vadd.f32 %v2300_v60, %v2089_v57  ;;  %v2302_v63 = vpop.f32.mrb[9].mxu1  ;;  %v2343_v0 = vpop.f32.mrb[17].mxu0  ;;  %v5422_v57 = vld [vmem:[%s7343_s7 + $0x5b4] ss:$28 sps:$4 sm:$0xff]  }
 0x384   :  { %v2303_v1 = vadd.f32 %v2302_v63, %v2093_v58  ;;  %v2344_v4 = vadd.f32 %v2343_v0, %v2101_v59  ;;  %v2304_v5 = vpop.f32.mrb[10].mxu1  ;;  %v2345_v6 = vpop.f32.mrb[18].mxu0  ;;  %v5425_v58 = vld [vmem:[%s7343_s7 + $0x5bc] ss:$28 sps:$4 sm:$0xff]   ;;  %v5420_v59 = vld [vmem:[%s7343_s7 + $0x5b0] ss:$28 sps:$4 sm:$0xff]  }
 0x385   :  { %v2348_v7 = vmax.f32 %v2301_v62, 0.0  ;;  %v2305_v8 = vpop.f32.mrb[11].mxu1  ;;  %v2346_v9 = vpop.f32.mrb[19].mxu0  ;;  %v5423_v60 = vld [vmem:[%s7343_s7 + $0x5b8] ss:$28 sps:$4 sm:$0xff]  }
 0x386   :  { %v2349_v11 = vmax.f32 %v2303_v1, 0.0  ;;  %v2351_v12 = vmax.f32 %v2344_v4, 0.0  ;;  %v5428_v62 = vld [vmem:[%s7343_s7 + $0x5ec] ss:$28 sps:$4 sm:$0xff]   ;;  %v5431_v63 = vld [vmem:[%s7343_s7 + $0x5f4] ss:$28 sps:$4 sm:$0xff]  }
 0x387   :  { %v6800_v16 = vpack.c.bf16 %v2348_v7, %v2348_v7  ;;  %v5426_v0 = vld [vmem:[%s7343_s7 + $0x5e8] ss:$28 sps:$4 sm:$0xff]   ;;  %v5429_v1 = vld [vmem:[%s7343_s7 + $0x5f0] ss:$28 sps:$4 sm:$0xff]   ;;  %v5432_v6 = vld [vmem:[%s7343_s7 + $0x620] ss:$28 sps:$4 sm:$0xff]  }
 0x388   :  { %v6792_v13 = vpack.c.bf16 %v2349_v11, %v2349_v11  ;;  %v6810_v19 = vpack.c.bf16 %v2351_v12, %v2351_v12  ;;  %v5434_v4 = vld [vmem:[%s7343_s7 + $0x624] ss:$28 sps:$4 sm:$0xff]   ;;  %v5437_v5 = vld [vmem:[%s7343_s7 + $0x62c] ss:$28 sps:$4 sm:$0xff]   ;;  %v5440_v8 = vld [vmem:[%s7343_s7 + $0x65c] ss:$28 sps:$4 sm:$0xff]  }
 0x389   :  { %v5435_v7 = vld [vmem:[%s7343_s7 + $0x628] ss:$28 sps:$4 sm:$0xff]   ;;  %v5438_v11 = vld [vmem:[%s7343_s7 + $0x658] ss:$28 sps:$4 sm:$0xff]   ;;  %v5441_v12 = vld [vmem:[%s7343_s7 + $0x660] ss:$28 sps:$4 sm:$0xff]  }
 0x38a   :  { %3833 = vmatprep.mubr.bf16.mxu1 %v6792_v13  ;;  %3915 = vmatprep.mubr.bf16.mxu0 %v6792_v13  ;;  %v5443_v9 = vld [vmem:[%s7343_s7 + $0x664] ss:$28 sps:$4 sm:$0xff]  }
 0x38b   :  { %3834 = vmatmul.mubr.bf16.vlgmr.msra.gmra.mrb[12].mxu1 %v6800_v16  ;;  %3916 = vmatmul.mubr.bf16.vlgmr.msra.gmra.mrb[20].mxu0 %v6800_v16 }
 0x38c   :  { %3843 = vmatpush1.bf16.msra.mxu1 %v5360_v14  ;;  %3925 = vmatpush1.bf16.msra.mxu0 %v5363_v15  ;;  %v2097_v14 = vrot.slane %v6782_v56, %v6443_v20  ;;  %v5446_v15 = vld [vmem:[%s7343_s7 + $0x694] ss:$28 sps:$4 sm:$0xff]  }
 0x38d   :  { %3874 = vmatprep.mubr.bf16.mxu1 %v6810_v19  ;;  %3956 = vmatprep.mubr.bf16.mxu0 %v6810_v19  ;;  %v5447_v56 = vld [vmem:[%s7343_s7 + $0x698] ss:$28 sps:$4 sm:$0xff]  }
 0x38e   :  { %3844 = vmatprep.subr.bf16.mxu1 %v5368_v17  ;;  %3926 = vmatprep.subr.bf16.mxu0 %v5371_v18  ;;  %v5449_v17 = vld [vmem:[%s7343_s7 + $0x69c] ss:$28 sps:$4 sm:$0xff]   ;;  %v5444_v18 = vld [vmem:[%s7343_s7 + $0x690] ss:$28 sps:$4 sm:$0xff]  }
 0x390   :  { %3845 = vmatpush1.bf16.msra.mxu1 %v5366_v21  ;;  %3927 = vmatpush1.bf16.msra.mxu0 %v5369_v22  ;;  %v2342_v21 = vadd.f32 %v6790_v61, %v2097_v14  ;;  %v5452_v22 = vld [vmem:[%s7343_s7 + $0x6cc] ss:$28 sps:$4 sm:$0xff]   ;;  %v5514_v14 = vld [vmem:[%s7343_s7 + $0x600] ss:$28 sps:$4 sm:$0xff]  }
 0x391   :  { %3846 = vmatprep.subr.bf16.mxu1 %v5374_v23  ;;  %3928 = vmatprep.subr.bf16.mxu0 %v5377_v24  ;;  %v5455_v23 = vld [vmem:[%s7343_s7 + $0x6d4] ss:$28 sps:$4 sm:$0xff]   ;;  %v5450_v24 = vld [vmem:[%s7343_s7 + $0x6c8] ss:$28 sps:$4 sm:$0xff]  }
 0x392   :  { %v5453_v61 = vld [vmem:[%s7343_s7 + $0x6d0] ss:$28 sps:$4 sm:$0xff]  }
 0x394   :  { %3847 = vmatpush1.bf16.msra.mxu1 %v5372_v25  ;;  %3929 = vmatpush1.bf16.msra.mxu0 %v5375_v26  ;;  %v2350_v25 = vmax.f32 %v2342_v21, 0.0  ;;  %v5458_v26 = vld [vmem:[%s7343_s7 + $0x14] ss:$28 sps:$4 sm:$0xff]  }
 0x395   :  { %3848 = vmatprep.subr.bf16.mxu1 %v5380_v27  ;;  %3930 = vmatprep.subr.bf16.mxu0 %v5383_v28  ;;  %v5459_v27 = vld [vmem:[%s7343_s7 + $0x1d8] ss:$28 sps:$4 sm:$0xff]   ;;  %v5456_v28 = vld [vmem:[%s7343_s7 + $0x10] ss:$28 sps:$4 sm:$0xff]  }
 0x396   :  { %v5516_v21 = vld [vmem:[%s7343_s7 + $0x2b0] ss:$28 sps:$4 sm:$0xff]  }
 0x398   :  { %3849 = vmatpush1.bf16.msra.mxu1 %v5378_v30  ;;  %3931 = vmatpush1.bf16.msra.mxu0 %v5381_v31  ;;  %v7002_v30 = vpack.c.bf16 %v2350_v25, %v2350_v25  ;;  %v5460_v31 = vld [vmem:[%s7343_s7 + $0x18] ss:$28 sps:$4 sm:$0xff]   ;;  %v5525_v25 = vld [vmem:[%s7343_s7 + $0x4b0] ss:$28 sps:$4 sm:$0xff]  }
 0x399   :  { %3850 = vmatprep.subr.bf16.mxu1 %v5386_v32  ;;  %3932 = vmatprep.subr.bf16.mxu0 %v5389_v33  ;;  %v5463_v32 = vld [vmem:[%s7343_s7 + $0x4c] ss:$28 sps:$4 sm:$0xff]  }
 0x39a   :  { %v5464_v33 = vld [vmem:[%s7343_s7 + $0x210] ss:$28 sps:$4 sm:$0xff]  }
 0x39c   :  { %3851 = vmatpush1.bf16.msra.mxu1 %v5384_v34  ;;  %3933 = vmatpush1.bf16.msra.mxu0 %v5387_v35  ;;  %v5461_v34 = vld [vmem:[%s7343_s7 + $0x48] ss:$28 sps:$4 sm:$0xff]   ;;  %v5465_v35 = vld [vmem:[%s7343_s7 + $0x50] ss:$28 sps:$4 sm:$0xff]  }
 0x39d   :  { %3852 = vmatprep.subr.bf16.mxu1 %v5392_v36  ;;  %3934 = vmatprep.subr.bf16.mxu0 %v5395_v37  ;;  %v5468_v36 = vld [vmem:[%s7343_s7 + $0x84] ss:$28 sps:$4 sm:$0xff]  }
 0x39e   :  { %v5469_v37 = vld [vmem:[%s7343_s7 + $0x248] ss:$28 sps:$4 sm:$0xff]  }
 0x3a0   :  { %3853 = vmatpush1.bf16.msra.mxu1 %v5390_v38  ;;  %3935 = vmatpush1.bf16.msra.mxu0 %v5393_v39  ;;  %v5466_v38 = vld [vmem:[%s7343_s7 + $0x80] ss:$28 sps:$4 sm:$0xff]  }
 0x3a1   :  { %3854 = vmatprep.subr.bf16.mxu1 %v5398_v40  ;;  %3936 = vmatprep.subr.bf16.mxu0 %v5401_v41  ;;  %v5473_v39 = vld [vmem:[%s7343_s7 + $0xbc] ss:$28 sps:$4 sm:$0xff]  }
 0x3a2   :  { %v5474_v40 = vld [vmem:[%s7343_s7 + $0x280] ss:$28 sps:$4 sm:$0xff]   ;;  %v5471_v41 = vld [vmem:[%s7343_s7 + $0xb8] ss:$28 sps:$4 sm:$0xff]  }
 0x3a4   :  { %3855 = vmatpush1.bf16.msra.mxu1 %v5396_v42  ;;  %3937 = vmatpush1.bf16.msra.mxu0 %v5399_v2  ;;  %v5475_v42 = vld [vmem:[%s7343_s7 + $0xc0] ss:$28 sps:$4 sm:$0xff]   ;;  %v5478_v2 = vld [vmem:[%s7343_s7 + $0xf4] ss:$28 sps:$4 sm:$0xff]  }
 0x3a5   :  { %3856 = vmatprep.subr.bf16.mxu1 %v5404_v10  ;;  %3938 = vmatprep.subr.bf16.mxu0 %v5407_v43  ;;  %v5479_v10 = vld [vmem:[%s7343_s7 + $0x2b8] ss:$28 sps:$4 sm:$0xff]   ;;  %v5476_v43 = vld [vmem:[%s7343_s7 + $0xf0] ss:$28 sps:$4 sm:$0xff]  }
 0x3a8   :  { %3857 = vmatpush1.bf16.msra.mxu1 %v5402_v44  ;;  %3939 = vmatpush1.bf16.msra.mxu0 %v5405_v45  ;;  %v5480_v44 = vld [vmem:[%s7343_s7 + $0xf8] ss:$28 sps:$4 sm:$0xff]   ;;  %v5483_v45 = vld [vmem:[%s7343_s7 + $0x12c] ss:$28 sps:$4 sm:$0xff]  }
 0x3a9   :  { %3858 = vmatprep.subr.bf16.mxu1 %v5410_v48  ;;  %3940 = vmatprep.subr.bf16.mxu0 %v5413_v50  ;;  %v5484_v48 = vld [vmem:[%s7343_s7 + $0x2f0] ss:$28 sps:$4 sm:$0xff]   ;;  %v5481_v50 = vld [vmem:[%s7343_s7 + $0x128] ss:$28 sps:$4 sm:$0xff]  }
 0x3ac   :  { %3859 = vmatpush1.bf16.msra.mxu1 %v5408_v51  ;;  %3941 = vmatpush1.bf16.msra.mxu0 %v5411_v52  ;;  %v5485_v51 = vld [vmem:[%s7343_s7 + $0x130] ss:$28 sps:$4 sm:$0xff]   ;;  %v5488_v52 = vld [vmem:[%s7343_s7 + $0x164] ss:$28 sps:$4 sm:$0xff]  }
 0x3ad   :  { %3860 = vmatprep.subr.bf16.mxu1 %v5416_v29  ;;  %3942 = vmatprep.subr.bf16.mxu0 %v5419_v53  ;;  %v5489_v29 = vld [vmem:[%s7343_s7 + $0x328] ss:$28 sps:$4 sm:$0xff]   ;;  %v5486_v53 = vld [vmem:[%s7343_s7 + $0x160] ss:$28 sps:$4 sm:$0xff]  }
 0x3b0   :  { %3861 = vmatpush1.bf16.msra.mxu1 %v5414_v54  ;;  %3943 = vmatpush1.bf16.msra.mxu0 %v5417_v55  ;;  %v5490_v54 = vld [vmem:[%s7343_s7 + $0x168] ss:$28 sps:$4 sm:$0xff]   ;;  %v5493_v55 = vld [vmem:[%s7343_s7 + $0x19c] ss:$28 sps:$4 sm:$0xff]  }
 0x3b1   :  { %3862 = vmatprep.subr.bf16.mxu1 %v5422_v57  ;;  %3944 = vmatprep.subr.bf16.mxu0 %v5425_v58  ;;  %v5494_v57 = vld [vmem:[%s7343_s7 + $0x360] ss:$28 sps:$4 sm:$0xff]   ;;  %v5491_v58 = vld [vmem:[%s7343_s7 + $0x198] ss:$28 sps:$4 sm:$0xff]  }
 0x3b4   :  { %3863 = vmatpush1.bf16.msra.mxu1 %v5420_v59  ;;  %3945 = vmatpush1.bf16.msra.mxu0 %v5423_v60  ;;  %v5495_v59 = vld [vmem:[%s7343_s7 + $0x1a0] ss:$28 sps:$4 sm:$0xff]   ;;  %v5498_v60 = vld [vmem:[%s7343_s7 + $0x1d4] ss:$28 sps:$4 sm:$0xff]  }
 0x3b5   :  { %3864 = vmatprep.subr.bf16.mxu1 %v5428_v62  ;;  %3946 = vmatprep.subr.bf16.mxu0 %v5431_v63  ;;  %v5499_v62 = vld [vmem:[%s7343_s7 + $0x558] ss:$28 sps:$4 sm:$0xff]   ;;  %v5496_v63 = vld [vmem:[%s7343_s7 + $0x1d0] ss:$28 sps:$4 sm:$0xff]  }
 0x3b8   :  { %3865 = vmatpush1.bf16.msra.mxu1 %v5426_v0  ;;  %3947 = vmatpush1.bf16.msra.mxu0 %v5429_v1  ;;  %v5500_v0 = vld [vmem:[%s7343_s7 + $0x398] ss:$28 sps:$4 sm:$0xff]   ;;  %v5503_v1 = vld [vmem:[%s7343_s7 + $0x20c] ss:$28 sps:$4 sm:$0xff]  }
 0x3b9   :  { %3866 = vmatprep.subr.bf16.mxu1 %v5434_v4  ;;  %3948 = vmatprep.subr.bf16.mxu0 %v5437_v5  ;;  %v5504_v4 = vld [vmem:[%s7343_s7 + $0x590] ss:$28 sps:$4 sm:$0xff]   ;;  %v5501_v5 = vld [vmem:[%s7343_s7 + $0x208] ss:$28 sps:$4 sm:$0xff]  }
 0x3bc   :  { %3867 = vmatpush1.bf16.msra.mxu1 %v5432_v6  ;;  %3949 = vmatpush1.bf16.msra.mxu0 %v5435_v7  ;;  %v5505_v6 = vld [vmem:[%s7343_s7 + $0x3d0] ss:$28 sps:$4 sm:$0xff]   ;;  %v5508_v7 = vld [vmem:[%s7343_s7 + $0x244] ss:$28 sps:$4 sm:$0xff]  }
 0x3bd   :  { %3868 = vmatprep.subr.bf16.mxu1 %v5440_v8  ;;  %3950 = vmatprep.subr.bf16.mxu0 %v5443_v9  ;;  %v5509_v8 = vld [vmem:[%s7343_s7 + $0x5c8] ss:$28 sps:$4 sm:$0xff]   ;;  %v5506_v9 = vld [vmem:[%s7343_s7 + $0x240] ss:$28 sps:$4 sm:$0xff]  }
 0x3c0   :  { %3869 = vmatpush1.bf16.msra.mxu1 %v5438_v11  ;;  %3951 = vmatpush1.bf16.msra.mxu0 %v5441_v12  ;;  %v5510_v11 = vld [vmem:[%s7343_s7 + $0x408] ss:$28 sps:$4 sm:$0xff]   ;;  %v5513_v12 = vld [vmem:[%s7343_s7 + $0x27c] ss:$28 sps:$4 sm:$0xff]  }
 0x3c1   :  { %3870 = vmatprep.subr.bf16.mxu1 %v5446_v15  ;;  %3952 = vmatprep.subr.bf16.mxu0 %v5449_v17  ;;  %v5511_v15 = vld [vmem:[%s7343_s7 + $0x278] ss:$28 sps:$4 sm:$0xff]   ;;  %v5515_v17 = vld [vmem:[%s7343_s7 + $0x440] ss:$28 sps:$4 sm:$0xff]  }
 0x3c4   :  { %3871 = vmatpush1.bf16.msra.mxu1 %v5444_v18  ;;  %3953 = vmatpush1.bf16.msra.mxu0 %v5447_v56  ;;  %v5518_v18 = vld [vmem:[%s7343_s7 + $0x2b4] ss:$28 sps:$4 sm:$0xff]  }
 0x3c5   :  { %3872 = vmatprep.subr.bf16.mxu1 %v5452_v22  ;;  %3954 = vmatprep.subr.bf16.mxu0 %v5455_v23  ;;  %v5519_v56 = vld [vmem:[%s7343_s7 + $0x638] ss:$28 sps:$4 sm:$0xff]   ;;  %v5523_v23 = vld [vmem:[%s7343_s7 + $0x2ec] ss:$28 sps:$4 sm:$0xff]  }
 0x3c6   :  { %v5520_v22 = vld [vmem:[%s7343_s7 + $0x478] ss:$28 sps:$4 sm:$0xff]  }
 0x3c8   :  { %3873 = vmatpush1.bf16.msra.mxu1 %v5450_v24  ;;  %3955 = vmatpush1.bf16.msra.mxu0 %v5453_v61  ;;  %v5524_v24 = vld [vmem:[%s7343_s7 + $0x670] ss:$28 sps:$4 sm:$0xff]   ;;  %v5521_v61 = vld [vmem:[%s7343_s7 + $0x2e8] ss:$28 sps:$4 sm:$0xff]  }
 0x3c9   :  { %3965 = vmatprep.subr.bf16.mxu1 %v5458_v26  ;;  %4785 = vmatprep.subr.bf16.mxu0 %v5459_v27  ;;  %v5528_v26 = vld [vmem:[%s7343_s7 + $0x324] ss:$28 sps:$4 sm:$0xff]  }
 0x3ca   :  { %v5529_v27 = vld [vmem:[%s7343_s7 + $0x6a8] ss:$28 sps:$4 sm:$0xff]  }
 0x3cb   :  { %3875 = vmatmul.mubr.bf16.vlgmr.msra.gmra.mrb[12].mxu1 %v7002_v30  ;;  %3957 = vmatmul.mubr.bf16.vlgmr.msra.gmra.mrb[20].mxu0 %v7002_v30 }
 0x3cc   :  { %3966 = vmatpush1.bf16.msra.mxu1 %v5456_v28  ;;  %3997 = vmatprep.mubr.bf16.mxu1 %v6792_v13  ;;  %v5526_v28 = vld [vmem:[%s7343_s7 + $0x320] ss:$28 sps:$4 sm:$0xff]  }
 0x3cd   :  { %4786 = vmatpush3.bf16.msra.mxu0 %v5460_v31  ;;  %4079 = vmatprep.mubr.bf16.mxu0 %v6792_v13  ;;  %v5470_v13 = vld [vmem:[%s7343_s7 + $0x88] ss:$28 sps:$4 sm:$0xff]  }
 0x3ce   :  { %3967 = vmatprep.subr.bf16.mxu1 %v5463_v32  ;;  %4787 = vmatprep.subr.bf16.mxu0 %v5464_v33  ;;  %v5530_v31 = vld [vmem:[%s7343_s7 + $0x4e8] ss:$28 sps:$4 sm:$0xff]   ;;  %v5533_v32 = vld [vmem:[%s7343_s7 + $0x35c] ss:$28 sps:$4 sm:$0xff]  }
 0x3cf   :  { %v5534_v33 = vld [vmem:[%s7343_s7 + $0x6e0] ss:$28 sps:$4 sm:$0xff]  }
 0x3d0   :  { %3968 = vmatpush1.bf16.msra.mxu1 %v5461_v34  ;;  %v5531_v34 = vld [vmem:[%s7343_s7 + $0x358] ss:$28 sps:$4 sm:$0xff]  }
 0x3d1   :  { %4788 = vmatpush3.bf16.msra.mxu0 %v5465_v35  ;;  %3969 = vmatprep.subr.bf16.mxu1 %v5468_v36  ;;  %v5535_v35 = vld [vmem:[%s7343_s7 + $0x520] ss:$28 sps:$4 sm:$0xff]   ;;  %v5538_v36 = vld [vmem:[%s7343_s7 + $0x394] ss:$28 sps:$4 sm:$0xff]  }
 0x3d2   :  { %4789 = vmatprep.subr.bf16.mxu0 %v5469_v37  ;;  %v5536_v37 = vld [vmem:[%s7343_s7 + $0x390] ss:$28 sps:$4 sm:$0xff]  }
 0x3d4   :  { %3970 = vmatpush1.bf16.msra.mxu1 %v5466_v38  ;;  %v5541_v38 = vld [vmem:[%s7343_s7 + $0x3cc] ss:$28 sps:$4 sm:$0xff]  }
 0x3d5   :  { %4790 = vmatpush3.bf16.msra.mxu0 %v5470_v13  ;;  %3971 = vmatprep.subr.bf16.mxu1 %v5473_v39  ;;  %v5539_v13 = vld [vmem:[%s7343_s7 + $0x3c8] ss:$28 sps:$4 sm:$0xff]  }
 0x3d6   :  { %4791 = vmatprep.subr.bf16.mxu0 %v5474_v40  ;;  %v5544_v39 = vld [vmem:[%s7343_s7 + $0x404] ss:$28 sps:$4 sm:$0xff]  }
 0x3d7   :  { %v5542_v40 = vld [vmem:[%s7343_s7 + $0x400] ss:$28 sps:$4 sm:$0xff]  }
 0x3d8   :  { %3972 = vmatpush1.bf16.msra.mxu1 %v5471_v41  ;;  %v5550_v41 = vld [vmem:[%s7343_s7 + $0x474] ss:$28 sps:$4 sm:$0xff]  }
 0x3d9   :  { %4792 = vmatpush3.bf16.msra.mxu0 %v5475_v42  ;;  %3973 = vmatprep.subr.bf16.mxu1 %v5478_v2  ;;  %v5548_v42 = vld [vmem:[%s7343_s7 + $0x470] ss:$28 sps:$4 sm:$0xff]  }
 0x3da   :  { %4793 = vmatprep.subr.bf16.mxu0 %v5479_v10  ;;  %v5553_v2 = vld [vmem:[%s7343_s7 + $0x4ac] ss:$28 sps:$4 sm:$0xff]  }
 0x3db   :  { %v5551_v10 = vld [vmem:[%s7343_s7 + $0x4a8] ss:$28 sps:$4 sm:$0xff]  }
 0x3dc   :  { %3974 = vmatpush1.bf16.msra.mxu1 %v5476_v43  ;;  %v5556_v43 = vld [vmem:[%s7343_s7 + $0x4e4] ss:$28 sps:$4 sm:$0xff]  }
 0x3dd   :  { %4794 = vmatpush3.bf16.msra.mxu0 %v5480_v44  ;;  %3975 = vmatprep.subr.bf16.mxu1 %v5483_v45  ;;  %v5554_v44 = vld [vmem:[%s7343_s7 + $0x4e0] ss:$28 sps:$4 sm:$0xff]  }
 0x3de   :  { %4795 = vmatprep.subr.bf16.mxu0 %v5484_v48  ;;  %v5559_v45 = vld [vmem:[%s7343_s7 + $0x51c] ss:$28 sps:$4 sm:$0xff]  }
 0x3df   :  { %v5557_v48 = vld [vmem:[%s7343_s7 + $0x518] ss:$28 sps:$4 sm:$0xff]  }
 0x3e0   :  { %3976 = vmatpush1.bf16.msra.mxu1 %v5481_v50  ;;  %v5562_v50 = vld [vmem:[%s7343_s7 + $0x554] ss:$28 sps:$4 sm:$0xff]  }
 0x3e1   :  { %4796 = vmatpush3.bf16.msra.mxu0 %v5485_v51  ;;  %3977 = vmatprep.subr.bf16.mxu1 %v5488_v52  ;;  %v5560_v51 = vld [vmem:[%s7343_s7 + $0x550] ss:$28 sps:$4 sm:$0xff]  }
 0x3e2   :  { %4797 = vmatprep.subr.bf16.mxu0 %v5489_v29  ;;  %v5565_v52 = vld [vmem:[%s7343_s7 + $0x58c] ss:$28 sps:$4 sm:$0xff]  }
 0x3e3   :  { %v5563_v29 = vld [vmem:[%s7343_s7 + $0x588] ss:$28 sps:$4 sm:$0xff]  }
 0x3e4   :  { %3978 = vmatpush1.bf16.msra.mxu1 %v5486_v53  ;;  %v5568_v53 = vld [vmem:[%s7343_s7 + $0x5c4] ss:$28 sps:$4 sm:$0xff]  }
 0x3e5   :  { %4798 = vmatpush3.bf16.msra.mxu0 %v5490_v54  ;;  %3979 = vmatprep.subr.bf16.mxu1 %v5493_v55  ;;  %v5566_v54 = vld [vmem:[%s7343_s7 + $0x5c0] ss:$28 sps:$4 sm:$0xff]  }
 0x3e6   :  { %4799 = vmatprep.subr.bf16.mxu0 %v5494_v57  ;;  %v5571_v55 = vld [vmem:[%s7343_s7 + $0x5fc] ss:$28 sps:$4 sm:$0xff]  }
 0x3e7   :  { %v5569_v57 = vld [vmem:[%s7343_s7 + $0x5f8] ss:$28 sps:$4 sm:$0xff]  }
 0x3e8   :  { %3980 = vmatpush1.bf16.msra.mxu1 %v5491_v58  ;;  %v5574_v58 = vld [vmem:[%s7343_s7 + $0x634] ss:$28 sps:$4 sm:$0xff]  }
 0x3e9   :  { %4800 = vmatpush3.bf16.msra.mxu0 %v5495_v59  ;;  %3981 = vmatprep.subr.bf16.mxu1 %v5498_v60  ;;  %v5572_v59 = vld [vmem:[%s7343_s7 + $0x630] ss:$28 sps:$4 sm:$0xff]  }
 0x3ea   :  { %4807 = vmatprep.subr.bf16.mxu0 %v5499_v62  ;;  %v5577_v60 = vld [vmem:[%s7343_s7 + $0x66c] ss:$28 sps:$4 sm:$0xff]  }
 0x3eb   :  { %v5575_v62 = vld [vmem:[%s7343_s7 + $0x668] ss:$28 sps:$4 sm:$0xff]  }
 0x3ec   :  { %4080 = vmatmul.mubr.bf16.vlgmr.msra.gmra.mrb[24].mxu0 %v6800_v16  ;;  %3982 = vmatpush1.bf16.msra.mxu1 %v5496_v63  ;;  %v5580_v63 = vld [vmem:[%s7343_s7 + $0x6a4] ss:$28 sps:$4 sm:$0xff]  }
 0x3ed   :  { %4808 = vmatpush3.bf16.msra.mxu0 %v5500_v0  ;;  %4119 = vmatprep.mubr.bf16.mxu0 %v6810_v19  ;;  %v5578_v0 = vld [vmem:[%s7343_s7 + $0x6a0] ss:$28 sps:$4 sm:$0xff]  }
 0x3ee   :  { %3983 = vmatprep.subr.bf16.mxu1 %v5503_v1  ;;  %4809 = vmatprep.subr.bf16.mxu0 %v5504_v4  ;;  %v5583_v1 = vld [vmem:[%s7343_s7 + $0x6dc] ss:$28 sps:$4 sm:$0xff]  }
 0x3ef   :  { %v5581_v4 = vld [vmem:[%s7343_s7 + $0x6d8] ss:$28 sps:$4 sm:$0xff]  }
 0x3f0   :  { %3984 = vmatpush1.bf16.msra.mxu1 %v5501_v5  ;;  %v7296_v5 = vld [vmem:[%s7344_s8] sm:$0x7f] }
 0x3f1   :  { %4810 = vmatpush3.bf16.msra.mxu0 %v5505_v6  ;;  %3985 = vmatprep.subr.bf16.mxu1 %v5508_v7  ;;  %v2617_v6 = vrot.slane %v7296_v5, %v6401_v47  ;;  %v2625_v7 = vrot.slane %v7296_v5, %v6443_v20 }
 0x3f2   :  { %4811 = vmatprep.subr.bf16.mxu0 %v5509_v8  ;;  %v2621_v8 = vrot.slane %v7296_v5, %v6407_v49 }
 0x3f4   :  { %3986 = vmatpush1.bf16.msra.mxu1 %v5506_v9  ;;  %v2629_v9 = vrot.slane %v7296_v5, %v6418_v3 }
 0x3f5   :  { %4812 = vmatpush3.bf16.msra.mxu0 %v5510_v11  ;;  %3987 = vmatprep.subr.bf16.mxu1 %v5513_v12 }
 0x3f6   :  { %4813 = vmatprep.subr.bf16.mxu0 %v5514_v14 }
 0x3f8   :  { %3988 = vmatpush1.bf16.msra.mxu1 %v5511_v15 }
 0x3f9   :  { %4814 = vmatpush3.bf16.msra.mxu0 %v5515_v17  ;;  %3989 = vmatprep.subr.bf16.mxu1 %v5518_v18 }
 0x3fa   :  { %4815 = vmatprep.subr.bf16.mxu0 %v5519_v56 }
 0x3fc   :  { %3990 = vmatpush1.bf16.msra.mxu1 %v5516_v21 }
 0x3fd   :  { %4816 = vmatpush3.bf16.msra.mxu0 %v5520_v22  ;;  %3991 = vmatprep.subr.bf16.mxu1 %v5523_v23 }
 0x3fe   :  { %4817 = vmatprep.subr.bf16.mxu0 %v5524_v24 }
 0x400   :  { %3992 = vmatpush1.bf16.msra.mxu1 %v5521_v61 }
 0x401   :  { %4818 = vmatpush3.bf16.msra.mxu0 %v5525_v25  ;;  %3993 = vmatprep.subr.bf16.mxu1 %v5528_v26 }
 0x402   :  { %4819 = vmatprep.subr.bf16.mxu0 %v5529_v27 }
 0x404   :  { %3994 = vmatpush1.bf16.msra.mxu1 %v5526_v28 }
 0x405   :  { %4820 = vmatpush3.bf16.msra.mxu0 %v5530_v31  ;;  %3995 = vmatprep.subr.bf16.mxu1 %v5533_v32 }
 0x406   :  { %4821 = vmatprep.subr.bf16.mxu0 %v5534_v33 }
 0x408   :  { %3996 = vmatpush1.bf16.msra.mxu1 %v5531_v34 }
 0x409   :  { %4822 = vmatpush3.bf16.msra.mxu0 %v5535_v35  ;;  %4006 = vmatprep.subr.bf16.mxu1 %v5538_v36 }
 0x40b   :  { %3998 = vmatmul.mubr.bf16.vlgmr.msra.gmra.mrb[16].mxu1 %v6800_v16  ;;  %v5547_v16 = vld [vmem:[%s7343_s7 + $0x43c] ss:$28 sps:$4 sm:$0xff]  }
 0x40c   :  { %4120 = vmatmul.mubr.bf16.vlgmr.msra.gmra.mrb[28].mxu0 %v7002_v30  ;;  %4007 = vmatpush1.bf16.msra.mxu1 %v5536_v37 }
 0x40d   :  { %4038 = vmatprep.mubr.bf16.mxu1 %v6810_v19  ;;  %4008 = vmatprep.subr.bf16.mxu1 %v5541_v38  ;;  %v5545_v19 = vld [vmem:[%s7343_s7 + $0x438] ss:$28 sps:$4 sm:$0xff]   ;;  %s5667_s7 = smov [#allocation4]  }
 0x40e   :  { %s4219_s8 = sshll.u32 %s5667_s7, 4  ;;  %s4220_s8 = int_to_ptr.vmem [resolvable:$true] %s4219_s8 }
 0x40f   :  { %s5614_s19 = scalar_lea.vmem %s4220_s8, 16  ;;  %s5618_s20 = scalar_lea.vmem %s4220_s8, 32 }
 0x410   :  { %4009 = vmatpush1.bf16.msra.mxu1 %v5539_v13  ;;  %p5615_p0 = scmp.ne.s32.totalorder %s4220_s8, %s5614_s19  ;;  %p5619_p1 = scmp.lt.s32.totalorder %s4220_s8, %s4220_s8 }
 0x411   :  { %4010 = vmatprep.subr.bf16.mxu1 %v5544_v39  ;;  %p5620_p2 = scmp.lt.s32.totalorder %s5618_s20, %s5614_s19 }
 0x413   :  { %p5621_p3 = por %p5620_p2, %p5619_p1 }
 0x414   :  { %4011 = vmatpush1.bf16.msra.mxu1 %v5542_v40 }
 0x415   :  { %4012 = vmatprep.subr.bf16.mxu1 %v5547_v16  ;;  %p5622_p4 = pnand %p5621_p3, %p5615_p0 }
 0x418   :  { %4013 = vmatpush1.bf16.msra.mxu1 %v5545_v19 }
 0x419   :  { %4014 = vmatprep.subr.bf16.mxu1 %v5550_v41 }
 0x41c   :  { %4015 = vmatpush1.bf16.msra.mxu1 %v5548_v42 }
 0x41d   :  { %4016 = vmatprep.subr.bf16.mxu1 %v5553_v2 }
 0x420   :  { %4017 = vmatpush1.bf16.msra.mxu1 %v5551_v10 }
 0x421   :  { %4018 = vmatprep.subr.bf16.mxu1 %v5556_v43 }
 0x424   :  { %4019 = vmatpush1.bf16.msra.mxu1 %v5554_v44 }
 0x425   :  { %4020 = vmatprep.subr.bf16.mxu1 %v5559_v45 }
 0x428   :  { %4021 = vmatpush1.bf16.msra.mxu1 %v5557_v48 }
 0x429   :  { %4022 = vmatprep.subr.bf16.mxu1 %v5562_v50 }
 0x42c   :  { %4023 = vmatpush1.bf16.msra.mxu1 %v5560_v51 }
 0x42d   :  { %4024 = vmatprep.subr.bf16.mxu1 %v5565_v52 }
 0x430   :  { %4025 = vmatpush1.bf16.msra.mxu1 %v5563_v29 }
 0x431   :  { %4026 = vmatprep.subr.bf16.mxu1 %v5568_v53 }
 0x434   :  { %4027 = vmatpush1.bf16.msra.mxu1 %v5566_v54 }
 0x435   :  { %4028 = vmatprep.subr.bf16.mxu1 %v5571_v55 }
 0x438   :  { %4029 = vmatpush1.bf16.msra.mxu1 %v5569_v57 }
 0x439   :  { %4030 = vmatprep.subr.bf16.mxu1 %v5574_v58 }
 0x43c   :  { %4031 = vmatpush1.bf16.msra.mxu1 %v5572_v59 }
 0x43d   :  { %4032 = vmatprep.subr.bf16.mxu1 %v5577_v60 }
 0x440   :  { %4033 = vmatpush1.bf16.msra.mxu1 %v5575_v62 }
 0x441   :  { %4034 = vmatprep.subr.bf16.mxu1 %v5580_v63 }
 0x444   :  { %4035 = vmatpush1.bf16.msra.mxu1 %v5578_v0 }
 0x445   :  { %4036 = vmatprep.subr.bf16.mxu1 %v5583_v1 }
 0x448   :  { %4037 = vmatpush1.bf16.msra.mxu1 %v5581_v4 }
 0x44b   :  { %4039 = vmatmul.mubr.bf16.vlgmr.msra.gmra.mrb[16].mxu1 %v7002_v30 }
 0x49e   :  { %v3876_v11 = vpop.f32.mrb[12].mxu1  ;;  %v3958_v12 = vpop.f32.mrb[20].mxu0 }
 0x49f   :  { %v4845_v30 = vadd.f32 %v3876_v11, %v2617_v6  ;;  %v4847_v14 = vadd.f32 %v3958_v12, %v2625_v7  ;;  %v3878_v15 = vpop.f32.mrb[13].mxu1  ;;  %v3960_v17 = vpop.f32.mrb[21].mxu0 }
 0x4a0   :  { %v4846_v18 = vadd.f32 %v3878_v15, %v2621_v8  ;;  %v4848_v56 = vadd.f32 %v3960_v17, %v2629_v9  ;;  %v3880_v21 = vpop.f32.mrb[14].mxu1  ;;  %v3962_v22 = vpop.f32.mrb[22].mxu0 }
 0x4a1   :  { %v4723_v47 = vmul.f32 -1.442695, %v4845_v30  ;;  %v4725_v23 = vmul.f32 -1.442695, %v4847_v14  ;;  %v3881_v24 = vpop.f32.mrb[15].mxu1  ;;  %v3963_v20 = vpop.f32.mrb[23].mxu0 }
 0x4a2   :  { %v4724_v61 = vmul.f32 -1.442695, %v4846_v18  ;;  %v4726_v25 = vmul.f32 -1.442695, %v4848_v56 }
 0x4a3   :  { %5586 = vpow2.f32 %v4723_v47 }
 0x4a4   :  { %5588 = vpow2.f32 %v4725_v23 }
 0x4a5   :  { %5590 = vpow2.f32 %v4724_v61 }
 0x4a6   :  { %5592 = vpow2.f32 %v4726_v25 }
 0x4ad   :  { %v5587_v49 = vpop.eup %5586 }
 0x4ae   :  { %v5589_v3 = vpop.eup %5588  ;;  %v4148_v26 = vadd.f32 1.0, %v5587_v49 }
 0x4af   :  { %v5591_v27 = vpop.eup %5590  ;;  %v4150_v28 = vadd.f32 1.0, %v5589_v3 }
 0x4b0   :  { %v5593_v31 = vpop.eup %5592  ;;  %5594 = vrcp.f32 %v4148_v26  ;;  %v4149_v32 = vadd.f32 1.0, %v5591_v27 }
 0x4b1   :  { %5596 = vrcp.f32 %v4150_v28  ;;  %v4151_v33 = vadd.f32 1.0, %v5593_v31 }
 0x4b2   :  { %5598 = vrcp.f32 %v4149_v32 }
 0x4b3   :  { %5600 = vrcp.f32 %v4151_v33 }
 0x4ba   :  { %v5595_v34 = vpop.eup %5594 }
 0x4bb   :  { %v5597_v35 = vpop.eup %5596 }
 0x4bc   :  { %v5599_v36 = vpop.eup %5598 }
 0x4bd   :  { %v5601_v37 = vpop.eup %5600  ;;  %v4734_v38 = vpack.c.bf16 %v5599_v36, %v5595_v34 }
 0x4be   :  { %v4735_v13 = vpack.c.bf16 %v5601_v37, %v5597_v35 }
 0x4bf   :  { %v4801_v39 = vpop.f32.mrb[24].mxu0  ;;  %4198 = vst [vmem:[#allocation2] sm:$0xff] %v4734_v38 }
 0x4c0   :  { %v4802_v40 = vpop.f32.mrb[25].mxu0  ;;  %4199 = vst [vmem:[#allocation2 + $0x8] sm:$0xff] %v4735_v13 }
 0x4c1   :  { %v4803_v16 = vadd.f32 %v4802_v40, %v4801_v39  ;;  %v4804_v19 = vpop.f32.mrb[26].mxu0 }
 0x4c2   :  { %5625 = shalt.err (!%p5622_p4)
}
 0x4c3   :  { %s5626_s5 = scalar_lea.hbm %s7347_s11, 16 }
 0x4c4   :  { %p5627_p5 = scmp.ne.s32.totalorder %s7347_s11, %s5626_s5  ;;  %p5630_p6 = scmp.lt.u32.totalorder %s5626_s5, %s7347_s11 }
 0x4c6   :  { %p5632_p7 = pnand %p5630_p6, %p5627_p5 }
 0x4c8   :  { %5635 = shalt.err (!%p5632_p7)
}
 0x4c9   :  { %4222 = dma.vmem_to_hbm [thread:$0]  %s4220_s8, 16, %s7347_s11, [#allocation5]   ;;  %v4805_v41 = vpop.f32.mrb[27].mxu0  ;;  %v2640_v42 = vsub.s32 6, %v6398_v46  ;;  %vm4201_vm6 = vcmask 125952   ;;  %v2632_v57 = vsub.s32 4, %v6398_v46 }
 0x4ca   :  { %v2636_v58 = vsub.s32 5, %v6398_v46  ;;  %s5668_s11 = smov [#allocation2]  }
 0x4cb   :  { %v2641_v2 = vrot.slane %v7296_v5, %v2640_v42  ;;  %v2633_v59 = vrot.slane %v7296_v5, %v2632_v57  ;;  %s4209_s3 = sshll.u32 %s5668_s11, 4  ;;  %s4210_s3 = int_to_ptr.vmem [resolvable:$true] %s4209_s3 }
 0x4cc   :  { %v2637_v60 = vrot.slane %v7296_v5, %v2636_v58  ;;  %s5636_s26 = scalar_lea.vmem %s4210_s3, 448  ;;  %p5641_p9 = scmp.lt.s32.totalorder %s4210_s3, %s4210_s3 }
 0x4cd   :  { %v4082_v44 = vadd.f32 %v4803_v16, %v2641_v2  ;;  %p5637_p8 = scmp.ne.s32.totalorder %s4210_s3, %s5636_s26  ;;  %p5642_p10 = scmp.lt.s32.totalorder %s5636_s26, %s5636_s26 }
 0x4cf   :  { %p5643_p11 = por %p5642_p10, %p5641_p9 }
 0x4d1   :  { %p5644_p12 = pnand %p5643_p11, %p5637_p8 }
 0x4df   :  { %v4823_v10 = vpop.f32.mrb[28].mxu0 }
 0x4e0   :  { %v4824_v43 = vpop.f32.mrb[29].mxu0 }
 0x4e1   :  { %v4825_v45 = vadd.f32 %v4824_v43, %v4823_v10  ;;  %v4826_v48 = vpop.f32.mrb[30].mxu0 }
 0x4e2   :  { %v4827_v50 = vpop.f32.mrb[31].mxu0 }
 0x4e3   :  { %v4122_v51 = vadd.f32 %v4825_v45, %v4082_v44 }
 0x4e5   :  { %v4729_v52 = vmul.f32 -1.442695, %v4122_v51 }
 0x4e7   :  { %5602 = vpow2.f32 %v4729_v52 }
 0x4f1   :  { %v5603_v29 = vpop.eup %5602 }
 0x4f2   :  { %v4154_v53 = vadd.f32 1.0, %v5603_v29 }
 0x4f4   :  { %5604 = vrcp.f32 %v4154_v53 }
 0x4fe   :  { %v5605_v54 = vpop.eup %5604 }
 0x4ff   :  { %v4737_v55 = vpack.c.bf16 %v5605_v54, %v5605_v54 }
 0x501   :  { %4202 = vst.msk [vmem:[#allocation2 + $0x18] sm:$0xf] %vm4201_vm6, %v4737_v55 }
 0x51e   :  { %v4040_v62 = vpop.f32.mrb[16].mxu1 }
 0x51f   :  { %v4849_v63 = vadd.f32 %v4040_v62, %v2633_v59  ;;  %v4042_v0 = vpop.f32.mrb[17].mxu1 }
 0x520   :  { %v4850_v1 = vadd.f32 %v4042_v0, %v2637_v60  ;;  %v4044_v4 = vpop.f32.mrb[18].mxu1 }
 0x521   :  { %v4727_v6 = vmul.f32 -1.442695, %v4849_v63  ;;  %v4045_v7 = vpop.f32.mrb[19].mxu1 }
 0x522   :  { %v4728_v8 = vmul.f32 -1.442695, %v4850_v1 }
 0x523   :  { %5606 = vpow2.f32 %v4727_v6 }
 0x524   :  { %5608 = vpow2.f32 %v4728_v8 }
 0x52d   :  { %v5607_v9 = vpop.eup %5606 }
 0x52e   :  { %v5609_v11 = vpop.eup %5608  ;;  %v4152_v12 = vadd.f32 1.0, %v5607_v9 }
 0x52f   :  { %v4153_v30 = vadd.f32 1.0, %v5609_v11 }
 0x530   :  { %5610 = vrcp.f32 %v4152_v12 }
 0x531   :  { %5612 = vrcp.f32 %v4153_v30 }
 0x53a   :  { %v5611_v46 = vpop.eup %5610 }
 0x53b   :  { %v5613_v5 = vpop.eup %5612 }
 0x53c   :  { %v4736_v14 = vpack.c.bf16 %v5613_v5, %v5611_v46 }
 0x53e   :  { %4200 = vst [vmem:[#allocation2 + $0x10] sm:$0xff] %v4736_v14 }
 0x53f   :  { %5647 = shalt.err (!%p5644_p12)
}
 0x540   :  { %s5648_s29 = scalar_lea.hbm %s7346_s10, 448 }
 0x541   :  { %p5649_p13 = scmp.ne.s32.totalorder %s7346_s10, %s5648_s29  ;;  %p5652_p0 = scmp.lt.u32.totalorder %s5648_s29, %s7346_s10 }
 0x543   :  { %p5654_p1 = pnand %p5652_p0, %p5649_p13 }
 0x545   :  { %5657 = shalt.err (!%p5654_p1)
}
 0x546   :  { %4212 = dma.vmem_to_hbm [thread:$0]  %s4210_s3, 448, %s7346_s10, [#allocation3]  }
 0x547   :  { %5658 = dma.done.wait [#allocation3], 448  }
 0x548   :  { %5659 = vsyncadd [#allocation3], 4294966848 }
 0x549   :  { %5660 = dma.done.wait [#allocation5], 16  }
 0x54a   :  { %5661 = vsyncadd [#allocation5], 4294967280 }
 0x54b   :  { %4229 = vsyncpa [#allocation3], 1 }
 0x54c   :  { %4230 = vsyncpa [#allocation5], 1 }

</bundles_post_ra>
